<compile_context>
chip_gen: v7x
topology: tpu7x:2x2x1
jax: 0.10.0
libtpu: 0.0.40
codegen_flags: <defaults>
</compile_context>

<pallas_src>
import numpy as np
import jax
import jax.numpy as jnp
from jax import lax
from jax.experimental import pallas as pl
from jax.experimental.pallas import tpu as pltpu

EPS = 1e-5          # torch.nn.BatchNorm1d default eps
NEG_SLOPE = 0.01    # torch.nn.LeakyReLU default negative_slope

C_IN, C_OUT, K, L = 16, 256, 24, 24      # num_channels, intermediate_channels, kernel, seq len
T = L + 2 * 1 - K + 1                    # conv output length = 3 (padding=1)
F = C_IN * L                             # in_features = 384
LIN = C_OUT * T                          # linear_layer_size = 768

# dot_general dimension numbers: contract last dim of both operands (q @ k^T pattern).
NT_DIMS = (((1,), (1,)), ((), ()))


def _leaky(x):
    # LeakyReLU with slope 0.01 == max(x, 0.01*x); lowers to a single vmax (VPU).
    return jnp.maximum(x, NEG_SLOPE * x)


def convnet_kernel(x_ref, wc_ref, bc_ref, weff_ref, beff_ref, o_ref):
    # conv1 (+ folded bn1) as one MXU matmul; pool1 (k=1) and dropout (eval) are identity.
    h = jnp.dot(x_ref[...], wc_ref[...], preferred_element_type=jnp.float32) + bc_ref[...]
    # leaky1
    h = _leaky(h)
    # bn3 + Linear(768 -> 1), folded into one weight row; contracted on the MXU.
    # Result is a lane-dense (1, batch_tile) row.
    out = lax.dot_general(weff_ref[...], h, NT_DIMS,
                          preferred_element_type=jnp.float32) + beff_ref[0]
    # leaky3
    o_ref[...] = _leaky(out)


def convnet_forward(x, kp, *, batch_tile=None):
    """x: (B, 384) float32. kp: folded kernel params from prepare_kernel_params."""
    wc, bc, weff, beff = kp
    B, f = x.shape
    assert f == F
    if batch_tile is None:
        batch_tile = 128 if B <= 128 else 256   # avoid padded work for small batches
    assert batch_tile % 128 == 0, "batch_tile must be a multiple of 128"

    num_tiles = pl.cdiv(B, batch_tile)
    Bp = num_tiles * batch_tile
    if Bp != B:                                   # pad batch up to a tile multiple
        x = jnp.pad(x, ((0, Bp - B), (0, 0)))

    out_row = pl.pallas_call(
        convnet_kernel,
        out_shape=jax.ShapeDtypeStruct((1, Bp), jnp.float32),
        grid_spec=pltpu.PrefetchScalarGridSpec(
            num_scalar_prefetch=0,
            grid=(num_tiles,),
            in_specs=[
                pl.BlockSpec((batch_tile, F), lambda i: (i, 0)),    # x tile
                pl.BlockSpec((F, LIN), lambda i: (0, 0)),           # folded conv weight (resident)
                pl.BlockSpec((1, LIN), lambda i: (0, 0)),           # folded conv bias row
                pl.BlockSpec((1, LIN), lambda i: (0, 0)),           # folded bn3+linear weight row
                pl.BlockSpec(memory_space=pltpu.MemorySpace.SMEM),  # folded linear bias scalar
            ],
            out_specs=pl.BlockSpec((1, batch_tile), lambda i: (0, i)),  # lane-dense output row
        ),
        compiler_params=pltpu.CompilerParams(
            dimension_semantics=("parallel",),
        ),
    )(x, wc, bc, weff, beff)

    return out_row.reshape(Bp, 1)[:B]


def init_params(key):
    ks = jax.random.split(key, 12)
    p = dict(
        gamma1=jax.random.uniform(ks[0], (F,), minval=0.8, maxval=1.2),
        beta1=jax.random.normal(ks[1], (F,)) * 0.1,
        mean1=jax.random.normal(ks[2], (F,)) * 0.1,
        var1=jax.random.uniform(ks[3], (F,), minval=0.5, maxval=1.5),
        w_conv=jax.random.normal(ks[4], (C_OUT, C_IN, K)) * 0.05,
        b_conv=jax.random.normal(ks[5], (C_OUT,)) * 0.05,
        gamma3=jax.random.uniform(ks[6], (LIN,), minval=0.8, maxval=1.2),
        beta3=jax.random.normal(ks[7], (LIN,)) * 0.1,
        mean3=jax.random.normal(ks[8], (LIN,)) * 0.1,
        var3=jax.random.uniform(ks[9], (LIN,), minval=0.5, maxval=1.5),
        w_ln=jax.random.normal(ks[10], (1, LIN)) * 0.05,
        b_ln=jax.random.normal(ks[11], (1,)) * 0.05,
    )
    return {k: v.astype(jnp.float32) for k, v in p.items()}


def prepare_kernel_params(p):
    """Host-side (float64) folding of bn1 -> conv weights and bn3+Linear -> weight row."""
    f64 = lambda a: np.asarray(a, dtype=np.float64)

    # --- weight-side im2col of Conv1d(C_IN -> C_OUT, K=24, stride=1, padding=1) ---
    # kernel column g = t*C_OUT + o  (t = conv output position, o = output channel)
    w = f64(p["w_conv"])                                   # (C_OUT, C_IN, K)
    wc = np.zeros((F, LIN), dtype=np.float64)
    for t in range(T):
        for k in range(K):
            src = t + k - 1                                # input position (padding=1)
            if 0 <= src < L:
                for c in range(C_IN):
                    wc[c * L + src, t * C_OUT:(t + 1) * C_OUT] = w[:, c, k]
    bc = np.tile(f64(p["b_conv"]), T)                      # bc[t*C_OUT + o] = b_conv[o]

    # --- fold bn1 (eval affine: y = x*s1 + t1) into the matmul ---
    s1 = f64(p["gamma1"]) / np.sqrt(f64(p["var1"]) + EPS)
    t1 = f64(p["beta1"]) - f64(p["mean1"]) * s1
    bc_fold = bc + t1 @ wc                                 # (LIN,)
    wc_fold = s1[:, None] * wc                             # (F, LIN)

    # --- fold bn3 + Linear(768 -> 1) into one weight row + scalar bias ---
    s3 = f64(p["gamma3"]) / np.sqrt(f64(p["var3"]) + EPS)  # torch flatten order f = o*T + t
    t3 = f64(p["beta3"]) - f64(p["mean3"]) * s3
    wln = f64(p["w_ln"]).reshape(-1)                       # (LIN,) torch order
    w_eff = s3 * wln                                       # torch order
    b_eff = float(f64(p["b_ln"]).reshape(())) + float(np.sum(t3 * wln))

    # permute to kernel column order: column g = t*C_OUT + o  <->  torch f = o*T + t
    g = np.arange(LIN)
    perm = (g % C_OUT) * T + (g // C_OUT)
    w_eff = w_eff[perm]

    return (
        jnp.asarray(wc_fold, dtype=jnp.float32),
        jnp.asarray(bc_fold.reshape(1, LIN), dtype=jnp.float32),
        jnp.asarray(w_eff.reshape(1, LIN), dtype=jnp.float32),
        jnp.asarray(np.array([b_eff]), dtype=jnp.float32),     # (1,) scalar in SMEM
    )


def reference_forward(x, p):
    """Literal pure-JAX transcription of the PyTorch forward (eval mode)."""
    B = x.shape[0]
    y = (x - p["mean1"]) * lax.rsqrt(p["var1"] + EPS) * p["gamma1"] + p["beta1"]
    y = y.reshape(B, C_IN, L)
    y = lax.conv_general_dilated(
        y, p["w_conv"], window_strides=(1,), padding=[(1, 1)],
        dimension_numbers=("NCH", "OIH", "NCH"),
        precision=lax.Precision.HIGHEST) + p["b_conv"][None, :, None]
    y = jnp.where(y >= 0, y, NEG_SLOPE * y)          # pool1/dropout identity, leaky1
    y = y.reshape(B, -1)                             # flatten: f = o*T + t
    y = (y - p["mean3"]) * lax.rsqrt(p["var3"] + EPS) * p["gamma3"] + p["beta3"]
    y = y @ p["w_ln"].T + p["b_ln"]
    return jnp.where(y >= 0, y, NEG_SLOPE * y)


if __name__ == "__main__":
    key = jax.random.PRNGKey(0)
    kx, kp = jax.random.split(key)
    B = 16                                   # small demo batch (padded to one 128-row tile)
    x = jax.random.normal(kx, (B, F), dtype=jnp.float32)

    params = init_params(kp)
    kparams = prepare_kernel_params(params)

    out = jax.block_until_ready(convnet_forward(x, kparams))

    ref = reference_forward(x, params)
    np.testing.assert_allclose(np.asarray(out), np.asarray(ref), rtol=5e-3, atol=5e-3)
    print("KERNEL_OK")
</pallas_src>

<mosaic_0001>
module attributes {stable_mosaic.version = 11 : i64} {
  func.func @convnet_kernel(%arg0: i32, %arg1: memref<128x384xf32, #tpu.memory_space<vmem>>, %arg2: memref<384x768xf32, #tpu.memory_space<vmem>>, %arg3: memref<1x768xf32, #tpu.memory_space<vmem>>, %arg4: memref<1x768xf32, #tpu.memory_space<vmem>>, %arg5: memref<1xf32, #tpu.memory_space<smem>>, %arg6: memref<1x128xf32, #tpu.memory_space<vmem>>) attributes {dimension_semantics = [#tpu.dimension_semantics<parallel>], iteration_bounds = array<i64: 1>, scalar_prefetch = 0 : i64, scratch_operands = 0 : i64, tpu.core_type = #tpu.core_type<tc>, window_params = [{transform_indices = @transform_0, window_bounds = array<i64: 128, 384>}, {pipeline_mode = #tpu.pipeline_mode<synchronous>, transform_indices = @transform_1, window_bounds = array<i64: 384, 768>}, {pipeline_mode = #tpu.pipeline_mode<synchronous>, transform_indices = @transform_2, window_bounds = array<i64: 1, 768>}, {pipeline_mode = #tpu.pipeline_mode<synchronous>, transform_indices = @transform_3, window_bounds = array<i64: 1, 768>}, {transform_indices = @transform_4, window_bounds = array<i64: 1>}, {transform_indices = @transform_5, window_bounds = array<i64: 1, 128>}]} {
    %c0 = arith.constant 0 : index
    %c0_0 = arith.constant 0 : index
    %0 = vector.load %arg1[%c0, %c0_0] : memref<128x384xf32, #tpu.memory_space<vmem>>, vector<128x384xf32>
    %c0_1 = arith.constant 0 : index
    %c0_2 = arith.constant 0 : index
    %1 = vector.load %arg2[%c0_1, %c0_2] : memref<384x768xf32, #tpu.memory_space<vmem>>, vector<384x768xf32>
    %cst = arith.constant dense<0.000000e+00> : vector<128x768xf32>
    %2 = tpu.matmul %0, %1, %cst {dimension_numbers = #tpu.dot_dimension_numbers<[1], [0], [0], [1], [0, 0, 1, 1], [], []>} : vector<128x384xf32>, vector<384x768xf32>, vector<128x768xf32> -> vector<128x768xf32>
    %c0_3 = arith.constant 0 : index
    %c0_4 = arith.constant 0 : index
    %3 = vector.load %arg3[%c0_3, %c0_4] : memref<1x768xf32, #tpu.memory_space<vmem>>, vector<1x768xf32>
    %4 = vector.broadcast %3 : vector<1x768xf32> to vector<128x768xf32>
    %5 = arith.addf %2, %4 : vector<128x768xf32>
    %cst_5 = arith.constant 0.00999999977 : f32
    %6 = vector.broadcast %cst_5 : f32 to vector<128x768xf32>
    %7 = arith.mulf %6, %5 : vector<128x768xf32>
    %8 = arith.maximumf %5, %7 : vector<128x768xf32>
    %c0_6 = arith.constant 0 : index
    %c0_7 = arith.constant 0 : index
    %9 = vector.load %arg4[%c0_6, %c0_7] : memref<1x768xf32, #tpu.memory_space<vmem>>, vector<1x768xf32>
    %cst_8 = arith.constant dense<0.000000e+00> : vector<1x128xf32>
    %10 = tpu.matmul %9, %8, %cst_8 {dimension_numbers = #tpu.dot_dimension_numbers<[1], [1], [0], [0], [0, 0, 1, 0], [], []>} : vector<1x768xf32>, vector<128x768xf32>, vector<1x128xf32> -> vector<1x128xf32>
    %c0_9 = arith.constant 0 : index
    %11 = memref.load %arg5[%c0_9] : memref<1xf32, #tpu.memory_space<smem>>
    %12 = vector.broadcast %11 : f32 to vector<1x128xf32>
    %13 = arith.addf %10, %12 : vector<1x128xf32>
    %cst_10 = arith.constant 0.00999999977 : f32
    %14 = vector.broadcast %cst_10 : f32 to vector<1x128xf32>
    %15 = arith.mulf %14, %13 : vector<1x128xf32>
    %16 = arith.maximumf %13, %15 : vector<1x128xf32>
    %c0_11 = arith.constant 0 : index
    %c0_12 = arith.constant 0 : index
    %17 = vector.load %arg6[%c0_11, %c0_12] : memref<1x128xf32, #tpu.memory_space<vmem>>, vector<1x128xf32>
    tpu.vector_store %arg6[%c0_11, %c0_12], %16 {strides = array<i32>} : memref<1x128xf32, #tpu.memory_space<vmem>>, vector<1x128xf32>,
    return
  }
  func.func @transform_0(%arg0: i32) -> (i32, i32) {
    %c0_i32 = arith.constant 0 : i32
    %c0_i32_0 = arith.constant 0 : i32
    return %arg0, %c0_i32 : i32, i32
  }
  func.func @transform_1(%arg0: i32) -> (i32, i32) {
    %c0_i32 = arith.constant 0 : i32
    %c0_i32_0 = arith.constant 0 : i32
    %c0_i32_1 = arith.constant 0 : i32
    return %c0_i32, %c0_i32_0 : i32, i32
  }
  func.func @transform_2(%arg0: i32) -> (i32, i32) {
    %c0_i32 = arith.constant 0 : i32
    %c0_i32_0 = arith.constant 0 : i32
    %c0_i32_1 = arith.constant 0 : i32
    return %c0_i32, %c0_i32_0 : i32, i32
  }
  func.func @transform_3(%arg0: i32) -> (i32, i32) {
    %c0_i32 = arith.constant 0 : i32
    %c0_i32_0 = arith.constant 0 : i32
    %c0_i32_1 = arith.constant 0 : i32
    return %c0_i32, %c0_i32_0 : i32, i32
  }
  func.func @transform_4(%arg0: i32) -> i32 {
    %c0_i32 = arith.constant 0 : i32
    %c0_i32_0 = arith.constant 0 : i32
    return %c0_i32 : i32
  }
  func.func @transform_5(%arg0: i32) -> (i32, i32) {
    %c0_i32 = arith.constant 0 : i32
    %c0_i32_0 = arith.constant 0 : i32
    return %c0_i32, %arg0 : i32, i32
  }
}

</mosaic_0001>

<bundles_post_ra>
// kernel: tpu_custom_call.1
= control target key start
LH: loop header
LB: loop body
LE: loop exit
PB: predicated region body
PF: predicated region fallthrough
CT: control target
= control target key end

     0   :  { %11 = vsyncpa [#allocation4], 0  ;;  %s3147_s0 = inlined_call_operand.hbm [shape: f32[128,384], index: 0, kind: input, shape index: {}]   ;;  %s3148_s1 = inlined_call_operand.hbm [shape: f32[384,768], index: 1, kind: input, shape index: {}]   ;;  %s3149_s2 = inlined_call_operand.hbm [shape: f32[1,768], index: 2, kind: input, shape index: {}]   ;;  %s3150_s3 = inlined_call_operand.hbm [shape: f32[1,768], index: 3, kind: input, shape index: {}]   ;;  %s3151_s4 = inlined_call_operand.<no memory space> [shape: f32[1], index: 4, kind: input, shape index: {}]   ;;  %s3152_s5 = inlined_call_operand.hbm [shape: f32[1,128], index: 5, kind: output, shape index: {}]  }
   0x1   :  { %12 = vsyncpa [#allocation7], 0 }
   0x2   :  { %13 = vsyncpa [#allocation10], 0 }
   0x3   :  { %14 = vsyncpa [#allocation5], 0  ;;  %s2573_s18 = smov [#allocation6]   ;;  %s2455_s22 = scalar_lea.hbm %s3148_s1, 36864 }
   0x4   :  { %s32_s19 = sshll.u32 %s2573_s18, 4  ;;  %p2456_p0 = scmp.ne.s32.totalorder %s3148_s1, %s2455_s22  ;;  %s33_s19 = int_to_ptr.vmem [resolvable:$true] %s32_s19 }
   0x5   :  { %p2459_p1 = scmp.lt.u32.totalorder %s2455_s22, %s3148_s1 }
   0x7   :  { %p2461_p2 = pnand %p2459_p1, %p2456_p0 }
   0x9   :  { %2464 = shalt.err (!%p2461_p2)
}
   0xa   :  { %s2465_s27 = scalar_lea.vmem %s33_s19, 36864  ;;  %p2470_p4 = scmp.lt.s32.totalorder %s33_s19, %s33_s19 }
   0xb   :  { %p2466_p3 = scmp.ne.s32.totalorder %s33_s19, %s2465_s27  ;;  %p2471_p5 = scmp.lt.s32.totalorder %s2465_s27, %s2465_s27 }
   0xd   :  { %p2472_p6 = por %p2471_p5, %p2470_p4 }
   0xf   :  { %p2473_p7 = pnand %p2472_p6, %p2466_p3 }
  0x11   :  { %2476 = shalt.err (!%p2473_p7)
}
  0x12   :  { %s2574_s28 = smov 768   ;;  %s2575_s29 = smov 48  }
  0x13   :  { %38 = dma.hbm_to_vmem [thread:$0]  %s3148_s1, 36864, %s33_s19, [#allocation7], %s2574_s28, %s2574_s28, %s2575_s29  }
  0x14   :  { %s2576_s7 = smov [#allocation3]   ;;  %s2477_s11 = scalar_lea.hbm %s3147_s0, 6144 }
  0x15   :  { %s20_s8 = sshll.u32 %s2576_s7, 4  ;;  %p2478_p8 = scmp.ne.s32.totalorder %s3147_s0, %s2477_s11  ;;  %s21_s8 = int_to_ptr.vmem [resolvable:$true] %s20_s8 }
  0x16   :  { %p2481_p9 = scmp.lt.u32.totalorder %s2477_s11, %s3147_s0 }
  0x18   :  { %p2483_p10 = pnand %p2481_p9, %p2478_p8 }
  0x1a   :  { %2486 = shalt.err (!%p2483_p10)
}
  0x1b   :  { %s2487_s16 = scalar_lea.vmem %s21_s8, 6144  ;;  %p2492_p12 = scmp.lt.s32.totalorder %s21_s8, %s21_s8 }
  0x1c   :  { %p2488_p11 = scmp.ne.s32.totalorder %s21_s8, %s2487_s16  ;;  %p2493_p13 = scmp.lt.s32.totalorder %s2487_s16, %s2487_s16 }
  0x1e   :  { %p2494_p0 = por %p2493_p13, %p2492_p12 }
  0x20   :  { %p2495_p1 = pnand %p2494_p0, %p2488_p11 }
  0x22   :  { %2498 = shalt.err (!%p2495_p1)
}
  0x23   :  { %s2577_s1 = smov 384   ;;  %s2578_s17 = smov 24  }
  0x24   :  { %26 = dma.hbm_to_vmem [thread:$0]  %s3147_s0, 6144, %s21_s8, [#allocation4], %s2577_s1, %s2577_s1, %s2578_s17  }
  0x25   :  { %s2579_s20 = smov [#allocation8]   ;;  %s2580_s22 = smov [#allocation9]  }
  0x26   :  { %s45_s21 = sshll.u32 %s2579_s20, 4  ;;  %s55_s23 = sshll.u32 %s2580_s22, 4  ;;  %s46_s21 = int_to_ptr.vmem [resolvable:$true] %s45_s21  ;;  %s56_s23 = int_to_ptr.vmem [resolvable:$true] %s55_s23 }
  0x27   :  { %s2499_s26 = scalar_lea.hbm %s3149_s2, 96 }
  0x28   :  { %p2500_p2 = scmp.ne.s32.totalorder %s3149_s2, %s2499_s26  ;;  %p2503_p3 = scmp.lt.u32.totalorder %s2499_s26, %s3149_s2 }
  0x2a   :  { %p2505_p4 = pnand %p2503_p3, %p2500_p2 }
  0x2c   :  { %2508 = shalt.err (!%p2505_p4)
}
  0x2d   :  { %s2509_s0 = scalar_lea.vmem %s46_s21, 96  ;;  %p2514_p6 = scmp.lt.s32.totalorder %s46_s21, %s46_s21 }
  0x2e   :  { %p2510_p5 = scmp.ne.s32.totalorder %s46_s21, %s2509_s0  ;;  %p2515_p7 = scmp.lt.s32.totalorder %s2509_s0, %s2509_s0 }
  0x30   :  { %p2516_p8 = por %p2515_p7, %p2514_p6 }
  0x32   :  { %p2517_p9 = pnand %p2516_p8, %p2510_p5 }
  0x34   :  { %2520 = shalt.err (!%p2517_p9)
}
  0x35   :  { %48 = dma.hbm_to_vmem [thread:$0]  %s3149_s2, 96, %s46_s21, [#allocation7]  }
  0x36   :  { %s2521_s10 = scalar_lea.hbm %s3150_s3, 96 }
  0x37   :  { %p2522_p10 = scmp.ne.s32.totalorder %s3150_s3, %s2521_s10  ;;  %p2525_p11 = scmp.lt.u32.totalorder %s2521_s10, %s3150_s3 }
  0x39   :  { %p2527_p12 = pnand %p2525_p11, %p2522_p10 }
  0x3b   :  { %2530 = shalt.err (!%p2527_p12)
}
  0x3c   :  { %s2531_s15 = scalar_lea.vmem %s56_s23, 96  ;;  %p2536_p0 = scmp.lt.s32.totalorder %s56_s23, %s56_s23 }
  0x3d   :  { %p2532_p13 = scmp.ne.s32.totalorder %s56_s23, %s2531_s15  ;;  %p2537_p1 = scmp.lt.s32.totalorder %s2531_s15, %s2531_s15 }
  0x3f   :  { %p2538_p2 = por %p2537_p1, %p2536_p0 }
  0x41   :  { %p2539_p3 = pnand %p2538_p2, %p2532_p13 }
  0x43   :  { %2542 = shalt.err (!%p2539_p3)
}
  0x44   :  { %58 = dma.hbm_to_vmem [thread:$0]  %s3150_s3, 96, %s56_s23, [#allocation10]  }
  0x45   :  { %2565 = dma.done.wait [#allocation4], 6144  }
  0x46   :  { %2566 = vsyncadd [#allocation4], 4294961152 }
  0x47   :  { %2567 = dma.done.wait [#allocation7], 36960  }
  0x48   :  { %2568 = vsyncadd [#allocation7], 4294930336 }
  0x49   :  { %2569 = dma.done.wait [#allocation10], 96  }
  0x4a   :  { %2570 = vsyncadd [#allocation10], 4294967200  ;;  %v122_v0 = vld [vmem:[#allocation6 + $0x8] sm:$0xff]  ;;  %v128_v1 = vld [vmem:[#allocation6 + $0x38] sm:$0xff]  ;;  %s2582_s17 = smov [#allocation11]  }
  0x4b   :  { %v124_v2 = vld [vmem:[#allocation6 + $0x18] sm:$0xff]  ;;  %v1863_v3 = vpack.c.bf16 %v128_v1, %v122_v0  ;;  %v130_v4 = vld [vmem:[#allocation6 + $0x48] sm:$0xff]  ;;  %v121_v5 = vld [vmem:[#allocation6] sm:$0xff]  ;;  %s1852_s18 = sshll.u32 %s2582_s17, 4  ;;  %s1853_s18 = int_to_ptr.vmem [resolvable:$true] %s1852_s18 }
  0x4c   :  { %v127_v6 = vld [vmem:[#allocation6 + $0x30] sm:$0xff]  ;;  %v1959_v7 = vpack.c.bf16 %v130_v4, %v124_v2  ;;  %v129_v10 = vld [vmem:[#allocation6 + $0x40] sm:$0xff]  ;;  %v134_v11 = vld [vmem:[#allocation6 + $0x68] sm:$0xff]  ;;  %s2543_s19 = scalar_lea.vmem %s1853_s18, 16  ;;  %s2547_s20 = scalar_lea.vmem %s1853_s18, 32 }
  0x4d   :  { %v1865_v8 = vpack.c.bf16 %v127_v6, %v121_v5  ;;  %v123_v9 = vld [vmem:[#allocation6 + $0x10] sm:$0xff]  ;;  %1864 = vmatprep.subr.bf16.mxu0 %v1863_v3  ;;  %v140_v13 = vld [vmem:[#allocation6 + $0x98] sm:$0xff]  ;;  %v142_v15 = vld [vmem:[#allocation6 + $0xa8] sm:$0xff]  ;;  %p2544_p4 = scmp.ne.s32.totalorder %s1853_s18, %s2543_s19  ;;  %p2548_p5 = scmp.lt.s32.totalorder %s1853_s18, %s1853_s18 }
  0x4e   :  { %v1961_v12 = vpack.c.bf16 %v129_v10, %v123_v9  ;;  %v136_v14 = vld [vmem:[#allocation6 + $0x78] sm:$0xff]  ;;  %1960 = vmatprep.subr.bf16.mxu1 %v1959_v7  ;;  %v1867_v16 = vpack.c.bf16 %v140_v13, %v134_v11  ;;  %v133_v18 = vld [vmem:[#allocation6 + $0x60] sm:$0xff]  ;;  %v139_v19 = vld [vmem:[#allocation6 + $0x90] sm:$0xff]  ;;  %p2549_p6 = scmp.lt.s32.totalorder %s2547_s20, %s2543_s19 }
  0x4f   :  { %1866 = vmatpush1.bf16.msra.mxu0 %v1865_v8  ;;  %v1963_v17 = vpack.c.bf16 %v142_v15, %v136_v14  ;;  %v135_v20 = vld [vmem:[#allocation6 + $0x70] sm:$0xff]  ;;  %v1869_v21 = vpack.c.bf16 %v139_v19, %v133_v18  ;;  %v141_v22 = vld [vmem:[#allocation6 + $0xa0] sm:$0xff]  ;;  %v146_v23 = vld [vmem:[#allocation6 + $0xc8] sm:$0xff] }
  0x50   :  { %1962 = vmatpush1.bf16.msra.mxu1 %v1961_v12  ;;  %v152_v24 = vld [vmem:[#allocation6 + $0xf8] sm:$0xff]  ;;  %1868 = vmatprep.subr.bf16.mxu0 %v1867_v16  ;;  %v1965_v25 = vpack.c.bf16 %v141_v22, %v135_v20  ;;  %v154_v28 = vld [vmem:[#allocation6 + $0x108] sm:$0xff]  ;;  %v145_v29 = vld [vmem:[#allocation6 + $0xc0] sm:$0xff]  ;;  %p2550_p7 = por %p2549_p6, %p2548_p5 }
  0x51   :  { %1964 = vmatprep.subr.bf16.mxu1 %v1963_v17  ;;  %v1871_v26 = vpack.c.bf16 %v152_v24, %v146_v23  ;;  %v148_v27 = vld [vmem:[#allocation6 + $0xd8] sm:$0xff]  ;;  %v151_v31 = vld [vmem:[#allocation6 + $0xf0] sm:$0xff]  ;;  %v153_v33 = vld [vmem:[#allocation6 + $0x100] sm:$0xff] }
  0x52   :  { %v1967_v30 = vpack.c.bf16 %v154_v28, %v148_v27  ;;  %v147_v32 = vld [vmem:[#allocation6 + $0xd0] sm:$0xff]  ;;  %v1873_v34 = vpack.c.bf16 %v151_v31, %v145_v29  ;;  %v158_v35 = vld [vmem:[#allocation6 + $0x128] sm:$0xff]  ;;  %v164_v36 = vld [vmem:[#allocation6 + $0x158] sm:$0xff]  ;;  %p2551_p8 = pnand %p2550_p7, %p2544_p4 }
  0x53   :  { %1870 = vmatpush1.bf16.msra.mxu0 %v1869_v21  ;;  %v160_v37 = vld [vmem:[#allocation6 + $0x138] sm:$0xff]  ;;  %v1969_v38 = vpack.c.bf16 %v153_v33, %v147_v32  ;;  %v1875_v39 = vpack.c.bf16 %v164_v36, %v158_v35  ;;  %v166_v40 = vld [vmem:[#allocation6 + $0x168] sm:$0xff]  ;;  %v157_v41 = vld [vmem:[#allocation6 + $0x120] sm:$0xff] }
  0x54   :  { %1966 = vmatpush1.bf16.msra.mxu1 %v1965_v25  ;;  %1872 = vmatprep.subr.bf16.mxu0 %v1871_v26  ;;  %v163_v42 = vld [vmem:[#allocation6 + $0x150] sm:$0xff]  ;;  %v1971_v43 = vpack.c.bf16 %v166_v40, %v160_v37  ;;  %v165_v45 = vld [vmem:[#allocation6 + $0x160] sm:$0xff]  ;;  %v170_v46 = vld [vmem:[#allocation6 + $0x188] sm:$0xff] }
  0x55   :  { %1968 = vmatprep.subr.bf16.mxu1 %v1967_v30  ;;  %v159_v44 = vld [vmem:[#allocation6 + $0x130] sm:$0xff]  ;;  %v176_v47 = vld [vmem:[#allocation6 + $0x1b8] sm:$0xff]  ;;  %v178_v49 = vld [vmem:[#allocation6 + $0x1c8] sm:$0xff]  ;;  %v1877_v50 = vpack.c.bf16 %v163_v42, %v157_v41 }
  0x56   :  { %v172_v48 = vld [vmem:[#allocation6 + $0x198] sm:$0xff]  ;;  %v1973_v51 = vpack.c.bf16 %v165_v45, %v159_v44  ;;  %v1879_v52 = vpack.c.bf16 %v176_v47, %v170_v46  ;;  %v169_v53 = vld [vmem:[#allocation6 + $0x180] sm:$0xff]  ;;  %v175_v54 = vld [vmem:[#allocation6 + $0x1b0] sm:$0xff] }
  0x57   :  { %1874 = vmatpush1.bf16.msra.mxu0 %v1873_v34  ;;  %v171_v55 = vld [vmem:[#allocation6 + $0x190] sm:$0xff]  ;;  %v1975_v56 = vpack.c.bf16 %v178_v49, %v172_v48  ;;  %v177_v57 = vld [vmem:[#allocation6 + $0x1c0] sm:$0xff]  ;;  %v182_v58 = vld [vmem:[#allocation6 + $0x1e8] sm:$0xff]  ;;  %v1881_v62 = vpack.c.bf16 %v175_v54, %v169_v53 }
  0x58   :  { %1970 = vmatpush1.bf16.msra.mxu1 %v1969_v38  ;;  %1876 = vmatprep.subr.bf16.mxu0 %v1875_v39  ;;  %v188_v59 = vld [vmem:[#allocation6 + $0x218] sm:$0xff]  ;;  %v190_v61 = vld [vmem:[#allocation6 + $0x228] sm:$0xff]  ;;  %v1977_v63 = vpack.c.bf16 %v177_v57, %v171_v55  ;;  %v181_v1 = vld [vmem:[#allocation6 + $0x1e0] sm:$0xff] }
  0x59   :  { %1972 = vmatprep.subr.bf16.mxu1 %v1971_v43  ;;  %v184_v60 = vld [vmem:[#allocation6 + $0x1f8] sm:$0xff]  ;;  %v1883_v0 = vpack.c.bf16 %v188_v59, %v182_v58  ;;  %v187_v2 = vld [vmem:[#allocation6 + $0x210] sm:$0xff]  ;;  %v189_v5 = vld [vmem:[#allocation6 + $0x220] sm:$0xff] }
  0x5a   :  { %v183_v3 = vld [vmem:[#allocation6 + $0x1f0] sm:$0xff]  ;;  %v1979_v4 = vpack.c.bf16 %v190_v61, %v184_v60  ;;  %v194_v6 = vld [vmem:[#allocation6 + $0x248] sm:$0xff]  ;;  %v200_v7 = vld [vmem:[#allocation6 + $0x278] sm:$0xff]  ;;  %v1885_v10 = vpack.c.bf16 %v187_v2, %v181_v1 }
  0x5b   :  { %1878 = vmatpush1.bf16.msra.mxu0 %v1877_v50  ;;  %v196_v8 = vld [vmem:[#allocation6 + $0x258] sm:$0xff]  ;;  %v202_v9 = vld [vmem:[#allocation6 + $0x288] sm:$0xff]  ;;  %v1981_v11 = vpack.c.bf16 %v189_v5, %v183_v3  ;;  %v1887_v12 = vpack.c.bf16 %v200_v7, %v194_v6  ;;  %v193_v13 = vld [vmem:[#allocation6 + $0x240] sm:$0xff] }
  0x5c   :  { %1974 = vmatpush1.bf16.msra.mxu1 %v1973_v51  ;;  %1880 = vmatprep.subr.bf16.mxu0 %v1879_v52  ;;  %v199_v14 = vld [vmem:[#allocation6 + $0x270] sm:$0xff]  ;;  %v1983_v16 = vpack.c.bf16 %v202_v9, %v196_v8  ;;  %v201_v17 = vld [vmem:[#allocation6 + $0x280] sm:$0xff]  ;;  %v206_v18 = vld [vmem:[#allocation6 + $0x2a8] sm:$0xff] }
  0x5d   :  { %1976 = vmatprep.subr.bf16.mxu1 %v1975_v56  ;;  %v195_v15 = vld [vmem:[#allocation6 + $0x250] sm:$0xff]  ;;  %v212_v19 = vld [vmem:[#allocation6 + $0x2d8] sm:$0xff]  ;;  %v214_v21 = vld [vmem:[#allocation6 + $0x2e8] sm:$0xff]  ;;  %v1889_v22 = vpack.c.bf16 %v199_v14, %v193_v13 }
  0x5e   :  { %v208_v20 = vld [vmem:[#allocation6 + $0x2b8] sm:$0xff]  ;;  %v1985_v23 = vpack.c.bf16 %v201_v17, %v195_v15  ;;  %v1891_v24 = vpack.c.bf16 %v212_v19, %v206_v18  ;;  %v205_v25 = vld [vmem:[#allocation6 + $0x2a0] sm:$0xff]  ;;  %v211_v26 = vld [vmem:[#allocation6 + $0x2d0] sm:$0xff] }
  0x5f   :  { %1882 = vmatpush1.bf16.msra.mxu0 %v1881_v62  ;;  %v207_v27 = vld [vmem:[#allocation6 + $0x2b0] sm:$0xff]  ;;  %v1987_v28 = vpack.c.bf16 %v214_v21, %v208_v20  ;;  %v213_v29 = vld [vmem:[#allocation6 + $0x2e0] sm:$0xff]  ;;  %v218_v30 = vld [vmem:[#allocation6 + $0x308] sm:$0xff]  ;;  %v1893_v34 = vpack.c.bf16 %v211_v26, %v205_v25 }
  0x60   :  { %1978 = vmatpush1.bf16.msra.mxu1 %v1977_v63  ;;  %1884 = vmatprep.subr.bf16.mxu0 %v1883_v0  ;;  %v224_v31 = vld [vmem:[#allocation6 + $0x338] sm:$0xff]  ;;  %v226_v33 = vld [vmem:[#allocation6 + $0x348] sm:$0xff]  ;;  %v1989_v35 = vpack.c.bf16 %v213_v29, %v207_v27  ;;  %v217_v37 = vld [vmem:[#allocation6 + $0x300] sm:$0xff] }
  0x61   :  { %1980 = vmatprep.subr.bf16.mxu1 %v1979_v4  ;;  %v220_v32 = vld [vmem:[#allocation6 + $0x318] sm:$0xff]  ;;  %v1895_v36 = vpack.c.bf16 %v224_v31, %v218_v30  ;;  %v223_v38 = vld [vmem:[#allocation6 + $0x330] sm:$0xff]  ;;  %v225_v41 = vld [vmem:[#allocation6 + $0x340] sm:$0xff] }
  0x62   :  { %v219_v39 = vld [vmem:[#allocation6 + $0x310] sm:$0xff]  ;;  %v1991_v40 = vpack.c.bf16 %v226_v33, %v220_v32  ;;  %v230_v42 = vld [vmem:[#allocation6 + $0x368] sm:$0xff]  ;;  %v236_v43 = vld [vmem:[#allocation6 + $0x398] sm:$0xff]  ;;  %v1897_v46 = vpack.c.bf16 %v223_v38, %v217_v37 }
  0x63   :  { %1886 = vmatpush1.bf16.msra.mxu0 %v1885_v10  ;;  %v232_v44 = vld [vmem:[#allocation6 + $0x378] sm:$0xff]  ;;  %v238_v45 = vld [vmem:[#allocation6 + $0x3a8] sm:$0xff]  ;;  %v1993_v47 = vpack.c.bf16 %v225_v41, %v219_v39  ;;  %v1899_v48 = vpack.c.bf16 %v236_v43, %v230_v42  ;;  %v229_v49 = vld [vmem:[#allocation6 + $0x360] sm:$0xff] }
  0x64   :  { %1982 = vmatpush1.bf16.msra.mxu1 %v1981_v11  ;;  %1888 = vmatprep.subr.bf16.mxu0 %v1887_v12  ;;  %v235_v50 = vld [vmem:[#allocation6 + $0x390] sm:$0xff]  ;;  %v1995_v52 = vpack.c.bf16 %v238_v45, %v232_v44  ;;  %v237_v53 = vld [vmem:[#allocation6 + $0x3a0] sm:$0xff]  ;;  %v242_v54 = vld [vmem:[#allocation6 + $0x3c8] sm:$0xff] }
  0x65   :  { %1984 = vmatprep.subr.bf16.mxu1 %v1983_v16  ;;  %v231_v51 = vld [vmem:[#allocation6 + $0x370] sm:$0xff]  ;;  %v248_v55 = vld [vmem:[#allocation6 + $0x3f8] sm:$0xff]  ;;  %v250_v57 = vld [vmem:[#allocation6 + $0x408] sm:$0xff]  ;;  %v1901_v58 = vpack.c.bf16 %v235_v50, %v229_v49 }
  0x66   :  { %v244_v56 = vld [vmem:[#allocation6 + $0x3d8] sm:$0xff]  ;;  %v1997_v59 = vpack.c.bf16 %v237_v53, %v231_v51  ;;  %v1903_v60 = vpack.c.bf16 %v248_v55, %v242_v54  ;;  %v241_v61 = vld [vmem:[#allocation6 + $0x3c0] sm:$0xff]  ;;  %v247_v62 = vld [vmem:[#allocation6 + $0x3f0] sm:$0xff] }
  0x67   :  { %1890 = vmatpush1.bf16.msra.mxu0 %v1889_v22  ;;  %v243_v63 = vld [vmem:[#allocation6 + $0x3d0] sm:$0xff]  ;;  %v1999_v0 = vpack.c.bf16 %v250_v57, %v244_v56  ;;  %v249_v1 = vld [vmem:[#allocation6 + $0x400] sm:$0xff]  ;;  %v254_v2 = vld [vmem:[#allocation6 + $0x428] sm:$0xff]  ;;  %v1905_v6 = vpack.c.bf16 %v247_v62, %v241_v61 }
  0x68   :  { %1986 = vmatpush1.bf16.msra.mxu1 %v1985_v23  ;;  %1892 = vmatprep.subr.bf16.mxu0 %v1891_v24  ;;  %v260_v3 = vld [vmem:[#allocation6 + $0x458] sm:$0xff]  ;;  %v262_v5 = vld [vmem:[#allocation6 + $0x468] sm:$0xff]  ;;  %v253_v7 = vld [vmem:[#allocation6 + $0x420] sm:$0xff]  ;;  %v2001_v8 = vpack.c.bf16 %v249_v1, %v243_v63 }
  0x69   :  { %1988 = vmatprep.subr.bf16.mxu1 %v1987_v28  ;;  %v256_v4 = vld [vmem:[#allocation6 + $0x438] sm:$0xff]  ;;  %v1907_v9 = vpack.c.bf16 %v260_v3, %v254_v2  ;;  %v259_v10 = vld [vmem:[#allocation6 + $0x450] sm:$0xff]  ;;  %v261_v12 = vld [vmem:[#allocation6 + $0x460] sm:$0xff] }
  0x6a   :  { %v255_v11 = vld [vmem:[#allocation6 + $0x430] sm:$0xff]  ;;  %v2003_v13 = vpack.c.bf16 %v262_v5, %v256_v4  ;;  %v266_v14 = vld [vmem:[#allocation6 + $0x488] sm:$0xff]  ;;  %v272_v15 = vld [vmem:[#allocation6 + $0x4b8] sm:$0xff]  ;;  %v1909_v19 = vpack.c.bf16 %v259_v10, %v253_v7 }
  0x6b   :  { %1894 = vmatpush1.bf16.msra.mxu0 %v1893_v34  ;;  %v2661_v16 = vld [vmem:[#allocation3 + $0x8] sm:$0xff]  ;;  %v268_v17 = vld [vmem:[#allocation6 + $0x498] sm:$0xff]  ;;  %v2005_v20 = vpack.c.bf16 %v261_v12, %v255_v11  ;;  %v1911_v21 = vpack.c.bf16 %v272_v15, %v266_v14  ;;  %v265_v22 = vld [vmem:[#allocation6 + $0x480] sm:$0xff] }
  0x6c   :  { %1990 = vmatpush1.bf16.msra.mxu1 %v1989_v35  ;;  %1896 = vmatprep.subr.bf16.mxu0 %v1895_v36  ;;  %v274_v18 = vld [vmem:[#allocation6 + $0x4c8] sm:$0xff]  ;;  %v271_v23 = vld [vmem:[#allocation6 + $0x4b0] sm:$0xff]  ;;  %v273_v26 = vld [vmem:[#allocation6 + $0x4c0] sm:$0xff] }
  0x6d   :  { %1992 = vmatprep.subr.bf16.mxu1 %v1991_v40  ;;  %505 = vmatprep.mubr.f32.mxu0 %v2661_v16  ;;  %v267_v24 = vld [vmem:[#allocation6 + $0x490] sm:$0xff]  ;;  %v2007_v25 = vpack.c.bf16 %v274_v18, %v268_v17  ;;  %v278_v27 = vld [vmem:[#allocation6 + $0x4e8] sm:$0xff]  ;;  %v284_v28 = vld [vmem:[#allocation6 + $0x518] sm:$0xff]  ;;  %v1913_v31 = vpack.c.bf16 %v271_v23, %v265_v22 }
  0x6e   :  { %827 = vmatprep.mubr.f32.mxu1 %v2661_v16  ;;  %v280_v29 = vld [vmem:[#allocation6 + $0x4f8] sm:$0xff]  ;;  %v286_v30 = vld [vmem:[#allocation6 + $0x528] sm:$0xff]  ;;  %v2009_v32 = vpack.c.bf16 %v273_v26, %v267_v24  ;;  %v1915_v33 = vpack.c.bf16 %v284_v28, %v278_v27  ;;  %v277_v34 = vld [vmem:[#allocation6 + $0x4e0] sm:$0xff] }
  0x6f   :  { %1898 = vmatpush1.bf16.msra.mxu0 %v1897_v46  ;;  %v283_v35 = vld [vmem:[#allocation6 + $0x510] sm:$0xff]  ;;  %v2011_v37 = vpack.c.bf16 %v286_v30, %v280_v29  ;;  %v285_v38 = vld [vmem:[#allocation6 + $0x520] sm:$0xff]  ;;  %v290_v39 = vld [vmem:[#allocation6 + $0x548] sm:$0xff] }
  0x70   :  { %1994 = vmatpush1.bf16.msra.mxu1 %v1993_v47  ;;  %1900 = vmatprep.subr.bf16.mxu0 %v1899_v48  ;;  %v279_v36 = vld [vmem:[#allocation6 + $0x4f0] sm:$0xff]  ;;  %v296_v40 = vld [vmem:[#allocation6 + $0x578] sm:$0xff]  ;;  %v298_v42 = vld [vmem:[#allocation6 + $0x588] sm:$0xff]  ;;  %v1917_v43 = vpack.c.bf16 %v283_v35, %v277_v34 }
  0x71   :  { %1996 = vmatprep.subr.bf16.mxu1 %v1995_v52  ;;  %v292_v41 = vld [vmem:[#allocation6 + $0x558] sm:$0xff]  ;;  %v2013_v44 = vpack.c.bf16 %v285_v38, %v279_v36  ;;  %v1919_v45 = vpack.c.bf16 %v296_v40, %v290_v39  ;;  %v289_v46 = vld [vmem:[#allocation6 + $0x540] sm:$0xff]  ;;  %v295_v47 = vld [vmem:[#allocation6 + $0x570] sm:$0xff] }
  0x72   :  { %v291_v48 = vld [vmem:[#allocation6 + $0x550] sm:$0xff]  ;;  %v2015_v49 = vpack.c.bf16 %v298_v42, %v292_v41  ;;  %v297_v50 = vld [vmem:[#allocation6 + $0x580] sm:$0xff]  ;;  %v302_v51 = vld [vmem:[#allocation6 + $0x5a8] sm:$0xff]  ;;  %v1921_v55 = vpack.c.bf16 %v295_v47, %v289_v46 }
  0x73   :  { %1902 = vmatpush1.bf16.msra.mxu0 %v1901_v58  ;;  %v308_v52 = vld [vmem:[#allocation6 + $0x5d8] sm:$0xff]  ;;  %v310_v54 = vld [vmem:[#allocation6 + $0x5e8] sm:$0xff]  ;;  %v2017_v56 = vpack.c.bf16 %v297_v50, %v291_v48  ;;  %v301_v58 = vld [vmem:[#allocation6 + $0x5a0] sm:$0xff] }
  0x74   :  { %1998 = vmatpush1.bf16.msra.mxu1 %v1997_v59  ;;  %1904 = vmatprep.subr.bf16.mxu0 %v1903_v60  ;;  %v304_v53 = vld [vmem:[#allocation6 + $0x5b8] sm:$0xff]  ;;  %v1923_v57 = vpack.c.bf16 %v308_v52, %v302_v51  ;;  %v307_v59 = vld [vmem:[#allocation6 + $0x5d0] sm:$0xff]  ;;  %v309_v62 = vld [vmem:[#allocation6 + $0x5e0] sm:$0xff] }
  0x75   :  { %2000 = vmatprep.subr.bf16.mxu1 %v1999_v0  ;;  %v303_v60 = vld [vmem:[#allocation6 + $0x5b0] sm:$0xff]  ;;  %v2019_v61 = vpack.c.bf16 %v310_v54, %v304_v53  ;;  %v314_v63 = vld [vmem:[#allocation6 + $0x608] sm:$0xff]  ;;  %v320_v0 = vld [vmem:[#allocation6 + $0x638] sm:$0xff]  ;;  %v1925_v3 = vpack.c.bf16 %v307_v59, %v301_v58 }
  0x76   :  { %v316_v1 = vld [vmem:[#allocation6 + $0x618] sm:$0xff]  ;;  %v322_v2 = vld [vmem:[#allocation6 + $0x648] sm:$0xff]  ;;  %v2021_v4 = vpack.c.bf16 %v309_v62, %v303_v60  ;;  %v1927_v5 = vpack.c.bf16 %v320_v0, %v314_v63  ;;  %v319_v7 = vld [vmem:[#allocation6 + $0x630] sm:$0xff] }
  0x77   :  { %1906 = vmatpush1.bf16.msra.mxu0 %v1905_v6  ;;  %v313_v6 = vld [vmem:[#allocation6 + $0x600] sm:$0xff]  ;;  %v332_v10 = vld [vmem:[#allocation6 + $0x698] sm:$0xff]  ;;  %v315_v11 = vld [vmem:[#allocation6 + $0x610] sm:$0xff] }
  0x78   :  { %2002 = vmatpush1.bf16.msra.mxu1 %v2001_v8  ;;  %1908 = vmatprep.subr.bf16.mxu0 %v1907_v9  ;;  %v326_v8 = vld [vmem:[#allocation6 + $0x668] sm:$0xff]  ;;  %v2023_v9 = vpack.c.bf16 %v322_v2, %v316_v1  ;;  %v321_v12 = vld [vmem:[#allocation6 + $0x640] sm:$0xff]  ;;  %v1929_v14 = vpack.c.bf16 %v319_v7, %v313_v6  ;;  %v328_v15 = vld [vmem:[#allocation6 + $0x678] sm:$0xff] }
  0x79   :  { %2004 = vmatprep.subr.bf16.mxu1 %v2003_v13  ;;  %v2665_v13 = vld [vmem:[#allocation3] sm:$0xff]  ;;  %v334_v17 = vld [vmem:[#allocation6 + $0x6a8] sm:$0xff]  ;;  %v2025_v23 = vpack.c.bf16 %v321_v12, %v315_v11  ;;  %v344_v24 = vld [vmem:[#allocation6 + $0x6f8] sm:$0xff] }
  0x7a   :  { %v2667_v18 = vld [vmem:[#allocation3 + $0x20] sm:$0xff]  ;;  %v338_v22 = vld [vmem:[#allocation6 + $0x6c8] sm:$0xff]  ;;  %v327_v26 = vld [vmem:[#allocation6 + $0x670] sm:$0xff] }
  0x7b   :  { %1910 = vmatpush1.bf16.msra.mxu0 %v1909_v19  ;;  %v1931_v19 = vpack.c.bf16 %v332_v10, %v326_v8  ;;  %v333_v27 = vld [vmem:[#allocation6 + $0x6a0] sm:$0xff]  ;;  %v2671_v28 = vld [vmem:[#allocation3 + $0x18] sm:$0xff]  ;;  %v346_v30 = vld [vmem:[#allocation6 + $0x708] sm:$0xff] }
  0x7c   :  { %2006 = vmatpush1.bf16.msra.mxu1 %v2005_v20  ;;  %1912 = vmatprep.subr.bf16.mxu0 %v1911_v21  ;;  %v325_v20 = vld [vmem:[#allocation6 + $0x660] sm:$0xff]  ;;  %v331_v21 = vld [vmem:[#allocation6 + $0x690] sm:$0xff]  ;;  %v340_v29 = vld [vmem:[#allocation6 + $0x6d8] sm:$0xff] }
  0x7d   :  { %2008 = vmatprep.subr.bf16.mxu1 %v2007_v25  ;;  %v2027_v25 = vpack.c.bf16 %v334_v17, %v328_v15  ;;  %v337_v34 = vld [vmem:[#allocation6 + $0x6c0] sm:$0xff]  ;;  %v343_v35 = vld [vmem:[#allocation6 + $0x6f0] sm:$0xff]  ;;  %v350_v36 = vld [vmem:[#allocation6 + $0x728] sm:$0xff]  ;;  %v2031_v39 = vpack.c.bf16 %v346_v30, %v340_v29 }
  0x7e   :  { %v356_v38 = vld [vmem:[#allocation6 + $0x758] sm:$0xff]  ;;  %v339_v40 = vld [vmem:[#allocation6 + $0x6d0] sm:$0xff]  ;;  %v345_v41 = vld [vmem:[#allocation6 + $0x700] sm:$0xff]  ;;  %v1937_v46 = vpack.c.bf16 %v343_v35, %v337_v34 }
  0x7f   :  { %1914 = vmatpush1.bf16.msra.mxu0 %v1913_v31  ;;  %v2675_v31 = vld [vmem:[#allocation3 + $0x38] sm:$0xff]  ;;  %v2680_v42 = vld [vmem:[#allocation3 + $0x30] sm:$0xff]  ;;  %v1939_v47 = vpack.c.bf16 %v356_v38, %v350_v36  ;;  %v349_v48 = vld [vmem:[#allocation6 + $0x720] sm:$0xff]  ;;  %v2033_v51 = vpack.c.bf16 %v345_v41, %v339_v40 }
  0x80   :  { %2010 = vmatpush1.bf16.msra.mxu1 %v2009_v32  ;;  %1916 = vmatprep.subr.bf16.mxu0 %v1915_v33  ;;  %v1933_v32 = vpack.c.bf16 %v331_v21, %v325_v20  ;;  %v1935_v33 = vpack.c.bf16 %v344_v24, %v338_v22  ;;  %v362_v50 = vld [vmem:[#allocation6 + $0x788] sm:$0xff]  ;;  %v368_v52 = vld [vmem:[#allocation6 + $0x7b8] sm:$0xff]  ;;  %v351_v54 = vld [vmem:[#allocation6 + $0x730] sm:$0xff] }
  0x81   :  { %2012 = vmatprep.subr.bf16.mxu1 %v2011_v37  ;;  %v2029_v37 = vpack.c.bf16 %v333_v27, %v327_v26  ;;  %v370_v58 = vld [vmem:[#allocation6 + $0x7c8] sm:$0xff]  ;;  %v361_v62 = vld [vmem:[#allocation6 + $0x780] sm:$0xff]  ;;  %v367_v63 = vld [vmem:[#allocation6 + $0x7b0] sm:$0xff] }
  0x82   :  { %v2691_v59 = vld [vmem:[#allocation3 + $0x68] sm:$0xff]  ;;  %v380_v2 = vld [vmem:[#allocation6 + $0x818] sm:$0xff]  ;;  %v2696_v6 = vld [vmem:[#allocation3 + $0x60] sm:$0xff]  ;;  %v1945_v10 = vpack.c.bf16 %v367_v63, %v361_v62 }
  0x83   :  { %1918 = vmatpush1.bf16.msra.mxu0 %v1917_v43  ;;  %v352_v43 = vld [vmem:[#allocation6 + $0x738] sm:$0xff]  ;;  %v374_v0 = vld [vmem:[#allocation6 + $0x7e8] sm:$0xff]  ;;  %v373_v12 = vld [vmem:[#allocation6 + $0x7e0] sm:$0xff] }
  0x84   :  { %2014 = vmatpush1.bf16.msra.mxu1 %v2013_v44  ;;  %1920 = vmatprep.subr.bf16.mxu0 %v1919_v45  ;;  %v358_v44 = vld [vmem:[#allocation6 + $0x768] sm:$0xff]  ;;  %v2683_v45 = vld [vmem:[#allocation3 + $0x50] sm:$0xff]  ;;  %v376_v7 = vld [vmem:[#allocation6 + $0x7f8] sm:$0xff]  ;;  %v1947_v11 = vpack.c.bf16 %v380_v2, %v374_v0 }
  0x85   :  { %2016 = vmatprep.subr.bf16.mxu1 %v2015_v49  ;;  %v355_v49 = vld [vmem:[#allocation6 + $0x750] sm:$0xff]  ;;  %v2035_v53 = vpack.c.bf16 %v358_v44, %v352_v43  ;;  %v382_v8 = vld [vmem:[#allocation6 + $0x828] sm:$0xff]  ;;  %v381_v22 = vld [vmem:[#allocation6 + $0x820] sm:$0xff] }
  0x86   :  { %v1941_v60 = vpack.c.bf16 %v355_v49, %v349_v48  ;;  %v386_v15 = vld [vmem:[#allocation6 + $0x848] sm:$0xff]  ;;  %v2043_v20 = vpack.c.bf16 %v382_v8, %v376_v7  ;;  %v375_v21 = vld [vmem:[#allocation6 + $0x7f0] sm:$0xff]  ;;  %v388_v24 = vld [vmem:[#allocation6 + $0x858] sm:$0xff] }
  0x87   :  { %1922 = vmatpush1.bf16.msra.mxu0 %v1921_v55  ;;  %v357_v55 = vld [vmem:[#allocation6 + $0x760] sm:$0xff]  ;;  %v2707_v26 = vld [vmem:[#allocation3 + $0x98] sm:$0xff]  ;;  %v398_v34 = vld [vmem:[#allocation6 + $0x8a8] sm:$0xff] }
  0x88   :  { %2018 = vmatpush1.bf16.msra.mxu1 %v2017_v56  ;;  %1924 = vmatprep.subr.bf16.mxu0 %v1923_v57  ;;  %v2688_v56 = vld [vmem:[#allocation3 + $0x48] sm:$0xff]  ;;  %v364_v57 = vld [vmem:[#allocation6 + $0x798] sm:$0xff]  ;;  %v2037_v1 = vpack.c.bf16 %v357_v55, %v351_v54  ;;  %v385_v30 = vld [vmem:[#allocation6 + $0x840] sm:$0xff] }
  0x89   :  { %2020 = vmatprep.subr.bf16.mxu1 %v2019_v61  ;;  %v1943_v61 = vpack.c.bf16 %v368_v52, %v362_v50  ;;  %v404_v35 = vld [vmem:[#allocation6 + $0x8d8] sm:$0xff]  ;;  %v393_v38 = vld [vmem:[#allocation6 + $0x880] sm:$0xff]  ;;  %v406_v41 = vld [vmem:[#allocation6 + $0x8e8] sm:$0xff] }
  0x8a   :  { %v400_v40 = vld [vmem:[#allocation6 + $0x8b8] sm:$0xff]  ;;  %v2715_v43 = vld [vmem:[#allocation3 + $0xb0] sm:$0xff]  ;;  %v405_v52 = vld [vmem:[#allocation6 + $0x8e0] sm:$0xff] }
  0x8b   :  { %1926 = vmatpush1.bf16.msra.mxu0 %v1925_v3  ;;  %v2039_v3 = vpack.c.bf16 %v370_v58, %v364_v57  ;;  %v403_v48 = vld [vmem:[#allocation6 + $0x8d0] sm:$0xff]  ;;  %v132_v54 = vld [vmem:[#allocation6 + $0x58] sm:$0xff]  ;;  %v2720_v55 = vld [vmem:[#allocation3 + $0xa8] sm:$0xff] }
  0x8c   :  { %2022 = vmatpush1.bf16.msra.mxu1 %v2021_v4  ;;  %1928 = vmatprep.subr.bf16.mxu0 %v1927_v5  ;;  %v363_v4 = vld [vmem:[#allocation6 + $0x790] sm:$0xff]  ;;  %v369_v5 = vld [vmem:[#allocation6 + $0x7c0] sm:$0xff]  ;;  %v2723_v57 = vld [vmem:[#allocation3 + $0xc8] sm:$0xff] }
  0x8d   :  { %2024 = vmatprep.subr.bf16.mxu1 %v2023_v9  ;;  %v2699_v9 = vld [vmem:[#allocation3 + $0x80] sm:$0xff]  ;;  %v2041_v17 = vpack.c.bf16 %v369_v5, %v363_v4  ;;  %v399_v50 = vld [vmem:[#allocation6 + $0x8b0] sm:$0xff]  ;;  %v2736_v0 = vld [vmem:[#allocation3 + $0xd8] sm:$0xff] }
  0x8e   :  { %506 = vmatmul.mubr.f32.vlgmr.msra.gmra.mrb[0].mxu0 %v2665_v13  ;;  %v2728_v62 = vld [vmem:[#allocation3 + $0xc0] sm:$0xff]  ;;  %v2744_v2 = vld [vmem:[#allocation3 + $0xf0] sm:$0xff]  ;;  %v2752_v4 = vld [vmem:[#allocation3 + $0x108] sm:$0xff] }
  0x8f   :  { %828 = vmatmul.mubr.f32.vlgmr.msra.gmra.mrb[0].mxu1 %v2665_v13  ;;  %1930 = vmatpush1.bf16.msra.mxu0 %v1929_v14  ;;  %v379_v14 = vld [vmem:[#allocation6 + $0x810] sm:$0xff]  ;;  %v2731_v63 = vld [vmem:[#allocation3 + $0xe0] sm:$0xff]  ;;  %v2755_v5 = vld [vmem:[#allocation3 + $0x128] sm:$0xff] }
  0x90   :  { %511 = vmatprep.mubr.f32.mxu0 %v2667_v18  ;;  %833 = vmatprep.mubr.f32.mxu1 %v2667_v18  ;;  %v1949_v27 = vpack.c.bf16 %v379_v14, %v373_v12  ;;  %v2760_v7 = vld [vmem:[#allocation3 + $0x120] sm:$0xff]  ;;  %v2776_v12 = vld [vmem:[#allocation3 + $0x150] sm:$0xff] }
  0x91   :  { %1932 = vmatprep.subr.bf16.mxu0 %v1931_v19  ;;  %2026 = vmatpush1.bf16.msra.mxu1 %v2025_v23  ;;  %v392_v19 = vld [vmem:[#allocation6 + $0x878] sm:$0xff]  ;;  %v2763_v8 = vld [vmem:[#allocation3 + $0x140] sm:$0xff]  ;;  %v2779_v14 = vld [vmem:[#allocation3 + $0x170] sm:$0xff] }
  0x92   :  { %512 = vmatmul.mubr.f32.gmra.mrb[2].mxu0 %v2671_v28  ;;  %2028 = vmatprep.subr.bf16.mxu1 %v2027_v25  ;;  %v2704_v23 = vld [vmem:[#allocation3 + $0x78] sm:$0xff]  ;;  %v394_v25 = vld [vmem:[#allocation6 + $0x888] sm:$0xff]  ;;  %v1951_v29 = vpack.c.bf16 %v392_v19, %v386_v15  ;;  %v131_v19 = vld [vmem:[#allocation6 + $0x50] sm:$0xff] }
  0x93   :  { %834 = vmatmul.mubr.f32.gmra.mrb[2].mxu1 %v2671_v28  ;;  %517 = vmatprep.mubr.f32.mxu0 %v2675_v31  ;;  %v2047_v36 = vpack.c.bf16 %v394_v25, %v388_v24  ;;  %v2784_v15 = vld [vmem:[#allocation3 + $0x168] sm:$0xff]  ;;  %v2790_v24 = vld [vmem:[#allocation3 + $0x10] sm:$0xff] }
  0x94   :  { %839 = vmatprep.mubr.f32.mxu1 %v2675_v31  ;;  %1934 = vmatpush1.bf16.msra.mxu0 %v1933_v32  ;;  %v391_v32 = vld [vmem:[#allocation6 + $0x870] sm:$0xff] }
  0x95   :  { %1936 = vmatprep.subr.bf16.mxu0 %v1935_v33  ;;  %2030 = vmatpush1.bf16.msra.mxu1 %v2029_v37  ;;  %v2045_v33 = vpack.c.bf16 %v381_v22, %v375_v21  ;;  %v387_v37 = vld [vmem:[#allocation6 + $0x850] sm:$0xff]  ;;  %v1953_v44 = vpack.c.bf16 %v391_v32, %v385_v30  ;;  %v144_v21 = vld [vmem:[#allocation6 + $0xb8] sm:$0xff]  ;;  %v3153_v22 = vmov 0.0   ;;  %v150_v32 = vld [vmem:[#allocation6 + $0xe8] sm:$0xff] }
  0x96   :  { %518 = vmatmul.mubr.f32.gmra.mrb[4].mxu0 %v2680_v42  ;;  %2032 = vmatprep.subr.bf16.mxu1 %v2031_v39  ;;  %v2712_v39 = vld [vmem:[#allocation3 + $0x90] sm:$0xff]  ;;  %v2049_v49 = vpack.c.bf16 %v393_v38, %v387_v37 }
  0x97   :  { %840 = vmatmul.mubr.f32.gmra.mrb[4].mxu1 %v2680_v42  ;;  %523 = vmatprep.mubr.f32.mxu0 %v2683_v45  ;;  %v155_v37 = vld [vmem:[#allocation6 + $0x110] sm:$0xff] }
  0x98   :  { %845 = vmatprep.mubr.f32.mxu1 %v2683_v45  ;;  %1938 = vmatpush1.bf16.msra.mxu0 %v1937_v46  ;;  %v1955_v46 = vpack.c.bf16 %v404_v35, %v398_v34  ;;  %v2795_v34 = vld [vmem:[#allocation3 + $0x28] sm:$0xff] }
  0x99   :  { %1940 = vmatprep.subr.bf16.mxu0 %v1939_v47  ;;  %2034 = vmatpush1.bf16.msra.mxu1 %v2033_v51  ;;  %v397_v47 = vld [vmem:[#allocation6 + $0x8a0] sm:$0xff]  ;;  %v2051_v51 = vpack.c.bf16 %v406_v41, %v400_v40  ;;  %v162_v40 = vld [vmem:[#allocation6 + $0x148] sm:$0xff]  ;;  %v168_v41 = vld [vmem:[#allocation6 + $0x178] sm:$0xff] }
  0x9a   :  { %524 = vmatmul.mubr.f32.gmra.mrb[6].mxu0 %v2688_v56  ;;  %2036 = vmatprep.subr.bf16.mxu1 %v2035_v53  ;;  %v126_v53 = vld [vmem:[#allocation6 + $0x28] sm:$0xff]  ;;  %v1957_v58 = vpack.c.bf16 %v403_v48, %v397_v47  ;;  %v161_v47 = vld [vmem:[#allocation6 + $0x140] sm:$0xff]  ;;  %v167_v48 = vld [vmem:[#allocation6 + $0x170] sm:$0xff] }
  0x9b   :  { %846 = vmatmul.mubr.f32.gmra.mrb[6].mxu1 %v2688_v56  ;;  %529 = vmatprep.mubr.f32.mxu0 %v2691_v59 }
  0x9c   :  { %851 = vmatprep.mubr.f32.mxu1 %v2691_v59  ;;  %1942 = vmatpush1.bf16.msra.mxu0 %v1941_v60  ;;  %v2053_v60 = vpack.c.bf16 %v405_v52, %v399_v50  ;;  %v174_v50 = vld [vmem:[#allocation6 + $0x1a8] sm:$0xff]  ;;  %v2807_v52 = vld [vmem:[#allocation3 + $0x58] sm:$0xff] }
  0x9d   :  { %1944 = vmatprep.subr.bf16.mxu0 %v1943_v61  ;;  %2038 = vmatpush1.bf16.msra.mxu1 %v2037_v1  ;;  %v2055_v61 = vpack.c.bf16 %v132_v54, %v126_v53  ;;  %v2739_v1 = vld [vmem:[#allocation3 + $0xf8] sm:$0xff]  ;;  %v2069_v53 = vpack.c.bf16 %v167_v48, %v161_v47  ;;  %v173_v54 = vld [vmem:[#allocation6 + $0x1a0] sm:$0xff]  ;;  %v215_v48 = vld [vmem:[#allocation6 + $0x2f0] sm:$0xff] }
  0x9e   :  { %530 = vmatmul.mubr.f32.gmra.mrb[8].mxu0 %v2696_v6  ;;  %2040 = vmatprep.subr.bf16.mxu1 %v2039_v3  ;;  %v2747_v3 = vld [vmem:[#allocation3 + $0x110] sm:$0xff]  ;;  %v209_v47 = vld [vmem:[#allocation6 + $0x2c0] sm:$0xff] }
  0x9f   :  { %852 = vmatmul.mubr.f32.gmra.mrb[8].mxu1 %v2696_v6  ;;  %535 = vmatprep.mubr.f32.mxu0 %v2699_v9 }
  0xa0   :  { %857 = vmatprep.mubr.f32.mxu1 %v2699_v9  ;;  %1946 = vmatpush1.bf16.msra.mxu0 %v1945_v10  ;;  %v2768_v10 = vld [vmem:[#allocation3 + $0x138] sm:$0xff] }
  0xa1   :  { %1948 = vmatprep.subr.bf16.mxu0 %v1947_v11  ;;  %2042 = vmatpush1.bf16.msra.mxu1 %v2041_v17  ;;  %v2771_v11 = vld [vmem:[#allocation3 + $0x158] sm:$0xff]  ;;  %v125_v17 = vld [vmem:[#allocation6 + $0x20] sm:$0xff] }
  0xa2   :  { %536 = vmatmul.mubr.f32.gmra.mrb[10].mxu0 %v2704_v23  ;;  %2044 = vmatprep.subr.bf16.mxu1 %v2043_v20  ;;  %v138_v20 = vld [vmem:[#allocation6 + $0x88] sm:$0xff]  ;;  %v2057_v25 = vpack.c.bf16 %v131_v19, %v125_v17  ;;  %v192_v17 = vld [vmem:[#allocation6 + $0x238] sm:$0xff]  ;;  %v2813_v19 = vld [vmem:[#allocation3 + $0x70] sm:$0xff] }
  0xa3   :  { %858 = vmatmul.mubr.f32.gmra.mrb[10].mxu1 %v2704_v23  ;;  %541 = vmatprep.mubr.f32.mxu0 %v2707_v26  ;;  %v2059_v30 = vpack.c.bf16 %v144_v21, %v138_v20  ;;  %v185_v21 = vld [vmem:[#allocation6 + $0x200] sm:$0xff] }
  0xa4   :  { %863 = vmatprep.mubr.f32.mxu1 %v2707_v26  ;;  %1950 = vmatpush1.bf16.msra.mxu0 %v1949_v27  ;;  %v137_v27 = vld [vmem:[#allocation6 + $0x80] sm:$0xff] }
  0xa5   :  { %1952 = vmatprep.subr.bf16.mxu0 %v1951_v29  ;;  %2046 = vmatpush1.bf16.msra.mxu1 %v2045_v33  ;;  %v143_v29 = vld [vmem:[#allocation6 + $0xb0] sm:$0xff]  ;;  %v156_v33 = vld [vmem:[#allocation6 + $0x118] sm:$0xff] }
  0xa6   :  { %542 = vmatmul.mubr.f32.gmra.mrb[12].mxu0 %v2712_v39  ;;  %2048 = vmatprep.subr.bf16.mxu1 %v2047_v36  ;;  %v2061_v35 = vpack.c.bf16 %v143_v29, %v137_v27  ;;  %v149_v36 = vld [vmem:[#allocation6 + $0xe0] sm:$0xff]  ;;  %v2063_v38 = vpack.c.bf16 %v156_v33, %v150_v32  ;;  %v198_v29 = vld [vmem:[#allocation6 + $0x268] sm:$0xff] }
  0xa7   :  { %864 = vmatmul.mubr.f32.gmra.mrb[12].mxu1 %v2712_v39  ;;  %547 = vmatprep.mubr.f32.mxu0 %v2715_v43  ;;  %v2819_v32 = vld [vmem:[#allocation3 + $0x88] sm:$0xff] }
  0xa8   :  { %869 = vmatprep.mubr.f32.mxu1 %v2715_v43  ;;  %1954 = vmatpush1.bf16.msra.mxu0 %v1953_v44  ;;  %v2801_v44 = vld [vmem:[#allocation3 + $0x40] sm:$0xff] }
  0xa9   :  { %1956 = vmatprep.subr.bf16.mxu0 %v1955_v46  ;;  %2050 = vmatpush1.bf16.msra.mxu1 %v2049_v49  ;;  %v2065_v46 = vpack.c.bf16 %v155_v37, %v149_v36  ;;  %v2067_v49 = vpack.c.bf16 %v168_v41, %v162_v40  ;;  %v203_v36 = vld [vmem:[#allocation6 + $0x290] sm:$0xff]  ;;  %v216_v40 = vld [vmem:[#allocation6 + $0x2f8] sm:$0xff]  ;;  %v2825_v41 = vld [vmem:[#allocation3 + $0xa0] sm:$0xff] }
  0xaa   :  { %548 = vmatmul.mubr.f32.gmra.mrb[14].mxu0 %v2720_v55  ;;  %2052 = vmatprep.subr.bf16.mxu1 %v2051_v51  ;;  %v180_v51 = vld [vmem:[#allocation6 + $0x1d8] sm:$0xff] }
  0xab   :  { %870 = vmatmul.mubr.f32.gmra.mrb[14].mxu1 %v2720_v55  ;;  %553 = vmatprep.mubr.f32.mxu0 %v2723_v57 }
  0xac   :  { %875 = vmatprep.mubr.f32.mxu1 %v2723_v57  ;;  %1958 = vmatpush1.bf16.msra.mxu0 %v1957_v58  ;;  %v179_v58 = vld [vmem:[#allocation6 + $0x1d0] sm:$0xff] }
  0xad   :  { %2054 = vmatpush1.bf16.msra.mxu1 %v2053_v60  ;;  %2056 = vmatprep.subr.bf16.mxu0 %v2055_v61  ;;  %v2071_v60 = vpack.c.bf16 %v180_v51, %v174_v50  ;;  %v186_v61 = vld [vmem:[#allocation6 + $0x208] sm:$0xff]  ;;  %v2073_v20 = vpack.c.bf16 %v179_v58, %v173_v54  ;;  %v228_v51 = vld [vmem:[#allocation6 + $0x358] sm:$0xff]  ;;  %v2085_v54 = vpack.c.bf16 %v215_v48, %v209_v47  ;;  %v221_v58 = vld [vmem:[#allocation6 + $0x320] sm:$0xff] }
  0xae   :  { %554 = vmatmul.mubr.f32.gmra.mrb[16].mxu0 %v2728_v62  ;;  %v2075_v27 = vpack.c.bf16 %v192_v17, %v186_v61  ;;  %v222_v50 = vld [vmem:[#allocation6 + $0x328] sm:$0xff]  ;;  %v264_v48 = vld [vmem:[#allocation6 + $0x478] sm:$0xff] }
  0xaf   :  { %876 = vmatmul.mubr.f32.gmra.mrb[16].mxu1 %v2728_v62  ;;  %559 = vmatprep.mubr.f32.mxu0 %v2731_v63  ;;  %v2087_v61 = vpack.c.bf16 %v228_v51, %v222_v50  ;;  %v234_v17 = vld [vmem:[#allocation6 + $0x388] sm:$0xff]  ;;  %v257_v51 = vld [vmem:[#allocation6 + $0x440] sm:$0xff] }
  0xb0   :  { %881 = vmatprep.mubr.f32.mxu1 %v2731_v63  ;;  %v258_v47 = vld [vmem:[#allocation6 + $0x448] sm:$0xff] }
  0xb2   :  { %560 = vmatmul.mubr.f32.gmra.mrb[18].mxu0 %v2736_v0 }
  0xb3   :  { %882 = vmatmul.mubr.f32.gmra.mrb[18].mxu1 %v2736_v0  ;;  %565 = vmatprep.mubr.f32.mxu0 %v2739_v1 }
  0xb4   :  { %887 = vmatprep.mubr.f32.mxu1 %v2739_v1 }
  0xb6   :  { %566 = vmatmul.mubr.f32.gmra.mrb[20].mxu0 %v2744_v2 }
  0xb7   :  { %888 = vmatmul.mubr.f32.gmra.mrb[20].mxu1 %v2744_v2  ;;  %571 = vmatprep.mubr.f32.mxu0 %v2747_v3 }
  0xb8   :  { %893 = vmatprep.mubr.f32.mxu1 %v2747_v3 }
  0xba   :  { %572 = vmatmul.mubr.f32.gmra.mrb[22].mxu0 %v2752_v4 }
  0xbb   :  { %894 = vmatmul.mubr.f32.gmra.mrb[22].mxu1 %v2752_v4  ;;  %577 = vmatprep.mubr.f32.mxu0 %v2755_v5 }
  0xbc   :  { %899 = vmatprep.mubr.f32.mxu1 %v2755_v5 }
  0xbe   :  { %578 = vmatmul.mubr.f32.gmra.mrb[24].mxu0 %v2760_v7 }
  0xbf   :  { %900 = vmatmul.mubr.f32.gmra.mrb[24].mxu1 %v2760_v7  ;;  %583 = vmatprep.mubr.f32.mxu0 %v2763_v8 }
  0xc0   :  { %905 = vmatprep.mubr.f32.mxu1 %v2763_v8 }
  0xc2   :  { %584 = vmatmul.mubr.f32.gmra.mrb[26].mxu0 %v2768_v10 }
  0xc3   :  { %906 = vmatmul.mubr.f32.gmra.mrb[26].mxu1 %v2768_v10  ;;  %589 = vmatprep.mubr.f32.mxu0 %v2771_v11 }
  0xc4   :  { %911 = vmatprep.mubr.f32.mxu1 %v2771_v11 }
  0xc6   :  { %590 = vmatmul.mubr.f32.gmra.mrb[28].mxu0 %v2776_v12 }
  0xc7   :  { %912 = vmatmul.mubr.f32.gmra.mrb[28].mxu1 %v2776_v12  ;;  %595 = vmatprep.mubr.f32.mxu0 %v2779_v14 }
  0xc8   :  { %917 = vmatprep.mubr.f32.mxu1 %v2779_v14 }
  0xca   :  { %596 = vmatmul.mubr.f32.gmra.mrb[30].mxu0 %v2784_v15 }
  0xcb   :  { %918 = vmatmul.mubr.f32.gmra.mrb[30].mxu1 %v2784_v15  ;;  %666 = vmatprep.mubr.f32.mxu0 %v3153_v22 }
  0xcc   :  { %988 = vmatprep.mubr.f32.mxu1 %v3153_v22 }
  0xce   :  { %667 = vmatmul.mubr.f32.vlgmr.msra.gmra.mrb[0].mxu0 %v2790_v24 }
  0xcf   :  { %989 = vmatmul.mubr.f32.vlgmr.msra.gmra.mrb[0].mxu1 %v2790_v24  ;;  %2058 = vmatpush1.bf16.msra.mxu0 %v2057_v25  ;;  %v191_v25 = vld [vmem:[#allocation6 + $0x230] sm:$0xff] }
  0xd0   :  { %672 = vmatprep.mubr.f32.mxu0 %v3153_v22  ;;  %994 = vmatprep.mubr.f32.mxu1 %v3153_v22  ;;  %v2077_v33 = vpack.c.bf16 %v191_v25, %v185_v21  ;;  %v2837_v21 = vld [vmem:[#allocation3 + $0xd0] sm:$0xff] }
  0xd1   :  { %2060 = vmatprep.subr.bf16.mxu0 %v2059_v30  ;;  %v204_v30 = vld [vmem:[#allocation6 + $0x298] sm:$0xff] }
  0xd2   :  { %673 = vmatmul.mubr.f32.gmra.mrb[2].mxu0 %v2795_v34  ;;  %v2079_v37 = vpack.c.bf16 %v204_v30, %v198_v29  ;;  %v239_v29 = vld [vmem:[#allocation6 + $0x3b0] sm:$0xff] }
  0xd3   :  { %995 = vmatmul.mubr.f32.gmra.mrb[2].mxu1 %v2795_v34  ;;  %2062 = vmatpush1.bf16.msra.mxu0 %v2061_v35  ;;  %v197_v35 = vld [vmem:[#allocation6 + $0x260] sm:$0xff] }
  0xd4   :  { %678 = vmatprep.mubr.f32.mxu0 %v3153_v22  ;;  %1000 = vmatprep.mubr.f32.mxu1 %v3153_v22 }
  0xd5   :  { %2064 = vmatprep.subr.bf16.mxu0 %v2063_v38  ;;  %v210_v38 = vld [vmem:[#allocation6 + $0x2c8] sm:$0xff] }
  0xd6   :  { %679 = vmatmul.mubr.f32.gmra.mrb[4].mxu0 %v2801_v44 }
  0xd7   :  { %1001 = vmatmul.mubr.f32.gmra.mrb[4].mxu1 %v2801_v44  ;;  %2066 = vmatpush1.bf16.msra.mxu0 %v2065_v46  ;;  %v2081_v46 = vpack.c.bf16 %v203_v36, %v197_v35  ;;  %v252_v35 = vld [vmem:[#allocation6 + $0x418] sm:$0xff]  ;;  %v2843_v36 = vld [vmem:[#allocation3 + $0xe8] sm:$0xff] }
  0xd8   :  { %684 = vmatprep.mubr.f32.mxu0 %v3153_v22  ;;  %1006 = vmatprep.mubr.f32.mxu1 %v3153_v22 }
  0xd9   :  { %2068 = vmatprep.subr.bf16.mxu0 %v2067_v49  ;;  %v2083_v49 = vpack.c.bf16 %v216_v40, %v210_v38  ;;  %v245_v38 = vld [vmem:[#allocation6 + $0x3e0] sm:$0xff]  ;;  %v251_v40 = vld [vmem:[#allocation6 + $0x410] sm:$0xff] }
  0xda   :  { %685 = vmatmul.mubr.f32.gmra.mrb[6].mxu0 %v2807_v52  ;;  %v2097_v50 = vpack.c.bf16 %v251_v40, %v245_v38  ;;  %v281_v38 = vld [vmem:[#allocation6 + $0x500] sm:$0xff]  ;;  %v287_v40 = vld [vmem:[#allocation6 + $0x530] sm:$0xff] }
  0xdb   :  { %1007 = vmatmul.mubr.f32.gmra.mrb[6].mxu1 %v2807_v52  ;;  %2070 = vmatpush1.bf16.msra.mxu0 %v2069_v53  ;;  %v2831_v53 = vld [vmem:[#allocation3 + $0xb8] sm:$0xff] }
  0xdc   :  { %690 = vmatprep.mubr.f32.mxu0 %v3153_v22  ;;  %1012 = vmatprep.mubr.f32.mxu1 %v3153_v22 }
  0xdd   :  { %2072 = vmatprep.subr.bf16.mxu0 %v2071_v60  ;;  %v227_v60 = vld [vmem:[#allocation6 + $0x350] sm:$0xff] }
  0xde   :  { %691 = vmatmul.mubr.f32.gmra.mrb[8].mxu0 %v2813_v19  ;;  %v2089_v25 = vpack.c.bf16 %v227_v60, %v221_v58  ;;  %v2099_v58 = vpack.c.bf16 %v264_v48, %v258_v47  ;;  %v270_v60 = vld [vmem:[#allocation6 + $0x4a8] sm:$0xff]  ;;  %v300_v48 = vld [vmem:[#allocation6 + $0x598] sm:$0xff] }
  0xdf   :  { %1013 = vmatmul.mubr.f32.gmra.mrb[8].mxu1 %v2813_v19  ;;  %2074 = vmatpush1.bf16.msra.mxu0 %v2073_v20  ;;  %v240_v20 = vld [vmem:[#allocation6 + $0x3b8] sm:$0xff]  ;;  %v294_v47 = vld [vmem:[#allocation6 + $0x568] sm:$0xff] }
  0xe0   :  { %696 = vmatprep.mubr.f32.mxu0 %v3153_v22  ;;  %1018 = vmatprep.mubr.f32.mxu1 %v3153_v22  ;;  %v2091_v30 = vpack.c.bf16 %v240_v20, %v234_v17  ;;  %v2855_v17 = vld [vmem:[#allocation3 + $0x118] sm:$0xff] }
  0xe1   :  { %2076 = vmatprep.subr.bf16.mxu0 %v2075_v27  ;;  %v233_v27 = vld [vmem:[#allocation6 + $0x380] sm:$0xff] }
  0xe2   :  { %697 = vmatmul.mubr.f32.gmra.mrb[10].mxu0 %v2819_v32 }
  0xe3   :  { %1019 = vmatmul.mubr.f32.gmra.mrb[10].mxu1 %v2819_v32  ;;  %2078 = vmatpush1.bf16.msra.mxu0 %v2077_v33  ;;  %v246_v33 = vld [vmem:[#allocation6 + $0x3e8] sm:$0xff] }
  0xe4   :  { %702 = vmatprep.mubr.f32.mxu0 %v3153_v22  ;;  %1024 = vmatprep.mubr.f32.mxu1 %v3153_v22 }
  0xe5   :  { %2080 = vmatprep.subr.bf16.mxu0 %v2079_v37  ;;  %v2093_v37 = vpack.c.bf16 %v239_v29, %v233_v27  ;;  %v275_v27 = vld [vmem:[#allocation6 + $0x4d0] sm:$0xff] }
  0xe6   :  { %703 = vmatmul.mubr.f32.gmra.mrb[12].mxu0 %v2825_v41 }
  0xe7   :  { %1025 = vmatmul.mubr.f32.gmra.mrb[12].mxu1 %v2825_v41  ;;  %2082 = vmatpush1.bf16.msra.mxu0 %v2081_v46  ;;  %v2095_v46 = vpack.c.bf16 %v252_v35, %v246_v33  ;;  %v288_v33 = vld [vmem:[#allocation6 + $0x538] sm:$0xff]  ;;  %v2861_v35 = vld [vmem:[#allocation3 + $0x130] sm:$0xff] }
  0xe8   :  { %708 = vmatprep.mubr.f32.mxu0 %v3153_v22  ;;  %1030 = vmatprep.mubr.f32.mxu1 %v3153_v22 }
  0xe9   :  { %2084 = vmatprep.subr.bf16.mxu0 %v2083_v49  ;;  %v2849_v49 = vld [vmem:[#allocation3 + $0x100] sm:$0xff] }
  0xea   :  { %709 = vmatmul.mubr.f32.gmra.mrb[14].mxu0 %v2831_v53 }
  0xeb   :  { %1031 = vmatmul.mubr.f32.gmra.mrb[14].mxu1 %v2831_v53  ;;  %2086 = vmatpush1.bf16.msra.mxu0 %v2085_v54  ;;  %v263_v54 = vld [vmem:[#allocation6 + $0x470] sm:$0xff] }
  0xec   :  { %714 = vmatprep.mubr.f32.mxu0 %v3153_v22  ;;  %1036 = vmatprep.mubr.f32.mxu1 %v3153_v22  ;;  %v2101_v20 = vpack.c.bf16 %v263_v54, %v257_v51  ;;  %v2109_v51 = vpack.c.bf16 %v287_v40, %v281_v38  ;;  %v293_v54 = vld [vmem:[#allocation6 + $0x560] sm:$0xff]  ;;  %v324_v38 = vld [vmem:[#allocation6 + $0x658] sm:$0xff] }
  0xed   :  { %2088 = vmatprep.subr.bf16.mxu0 %v2087_v61  ;;  %v276_v61 = vld [vmem:[#allocation6 + $0x4d8] sm:$0xff] }
  0xee   :  { %715 = vmatmul.mubr.f32.gmra.mrb[16].mxu0 %v2837_v21  ;;  %v2103_v29 = vpack.c.bf16 %v276_v61, %v270_v60  ;;  %v2111_v60 = vpack.c.bf16 %v300_v48, %v294_v47  ;;  %v306_v61 = vld [vmem:[#allocation6 + $0x5c8] sm:$0xff]  ;;  %v2879_v40 = vld [vmem:[#allocation3 + $0x178] sm:$0xff]  ;;  %v317_v48 = vld [vmem:[#allocation6 + $0x620] sm:$0xff] }
  0xef   :  { %1037 = vmatmul.mubr.f32.gmra.mrb[16].mxu1 %v2837_v21  ;;  %2090 = vmatpush1.bf16.msra.mxu0 %v2089_v25  ;;  %v269_v25 = vld [vmem:[#allocation6 + $0x4a0] sm:$0xff] }
  0xf0   :  { %720 = vmatprep.mubr.f32.mxu0 %v3153_v22  ;;  %1042 = vmatprep.mubr.f32.mxu1 %v3153_v22 }
  0xf1   :  { %2092 = vmatprep.subr.bf16.mxu0 %v2091_v30  ;;  %v282_v30 = vld [vmem:[#allocation6 + $0x508] sm:$0xff] }
  0xf2   :  { %721 = vmatmul.mubr.f32.gmra.mrb[18].mxu0 %v2843_v36 }
  0xf3   :  { %1043 = vmatmul.mubr.f32.gmra.mrb[18].mxu1 %v2843_v36  ;;  %2094 = vmatpush1.bf16.msra.mxu0 %v2093_v37  ;;  %v2105_v37 = vpack.c.bf16 %v275_v27, %v269_v25  ;;  %v2873_v25 = vld [vmem:[#allocation3 + $0x160] sm:$0xff] }
  0xf4   :  { %726 = vmatprep.mubr.f32.mxu0 %v3153_v22  ;;  %1048 = vmatprep.mubr.f32.mxu1 %v3153_v22 }
  0xf5   :  { %2096 = vmatprep.subr.bf16.mxu0 %v2095_v46  ;;  %v2107_v46 = vpack.c.bf16 %v288_v33, %v282_v30  ;;  %v311_v30 = vld [vmem:[#allocation6 + $0x5f0] sm:$0xff] }
  0xf6   :  { %727 = vmatmul.mubr.f32.gmra.mrb[20].mxu0 %v2849_v49 }
  0xf7   :  { %1049 = vmatmul.mubr.f32.gmra.mrb[20].mxu1 %v2849_v49  ;;  %2098 = vmatpush1.bf16.msra.mxu0 %v2097_v50  ;;  %v2867_v50 = vld [vmem:[#allocation3 + $0x148] sm:$0xff] }
  0xf8   :  { %732 = vmatprep.mubr.f32.mxu0 %v3153_v22  ;;  %1054 = vmatprep.mubr.f32.mxu1 %v3153_v22 }
  0xf9   :  { %2100 = vmatprep.subr.bf16.mxu0 %v2099_v58  ;;  %v299_v58 = vld [vmem:[#allocation6 + $0x590] sm:$0xff] }
  0xfa   :  { %733 = vmatmul.mubr.f32.gmra.mrb[22].mxu0 %v2855_v17  ;;  %v2113_v27 = vpack.c.bf16 %v299_v58, %v293_v54  ;;  %v330_v54 = vld [vmem:[#allocation6 + $0x688] sm:$0xff]  ;;  %v336_v58 = vld [vmem:[#allocation6 + $0x6b8] sm:$0xff] }
  0xfb   :  { %1055 = vmatmul.mubr.f32.gmra.mrb[22].mxu1 %v2855_v17  ;;  %2102 = vmatpush1.bf16.msra.mxu0 %v2101_v20  ;;  %v312_v20 = vld [vmem:[#allocation6 + $0x5f8] sm:$0xff] }
  0xfc   :  { %738 = vmatprep.mubr.f32.mxu0 %v3153_v22  ;;  %1060 = vmatprep.mubr.f32.mxu1 %v3153_v22  ;;  %v2115_v33 = vpack.c.bf16 %v312_v20, %v306_v61  ;;  %v2123_v61 = vpack.c.bf16 %v336_v58, %v330_v54  ;;  %v329_v20 = vld [vmem:[#allocation6 + $0x680] sm:$0xff]  ;;  %v366_v54 = vld [vmem:[#allocation6 + $0x7a8] sm:$0xff]  ;;  %v372_v58 = vld [vmem:[#allocation6 + $0x7d8] sm:$0xff] }
  0xfd   :  { %2104 = vmatprep.subr.bf16.mxu0 %v2103_v29  ;;  %v305_v29 = vld [vmem:[#allocation6 + $0x5c0] sm:$0xff] }
  0xfe   :  { %739 = vmatmul.mubr.f32.gmra.mrb[24].mxu0 %v2861_v35 }
  0xff   :  { %1061 = vmatmul.mubr.f32.gmra.mrb[24].mxu1 %v2861_v35  ;;  %2106 = vmatpush1.bf16.msra.mxu0 %v2105_v37  ;;  %v318_v37 = vld [vmem:[#allocation6 + $0x628] sm:$0xff] }
 0x100   :  { %744 = vmatprep.mubr.f32.mxu0 %v3153_v22  ;;  %1066 = vmatprep.mubr.f32.mxu1 %v3153_v22  ;;  %v2119_v47 = vpack.c.bf16 %v324_v38, %v318_v37  ;;  %v341_v38 = vld [vmem:[#allocation6 + $0x6e0] sm:$0xff] }
 0x101   :  { %2108 = vmatprep.subr.bf16.mxu0 %v2107_v46  ;;  %v2117_v46 = vpack.c.bf16 %v311_v30, %v305_v29  ;;  %v342_v29 = vld [vmem:[#allocation6 + $0x6e8] sm:$0xff]  ;;  %v348_v30 = vld [vmem:[#allocation6 + $0x718] sm:$0xff] }
 0x102   :  { %745 = vmatmul.mubr.f32.gmra.mrb[26].mxu0 %v2867_v50  ;;  %v2127_v37 = vpack.c.bf16 %v348_v30, %v342_v29  ;;  %v377_v29 = vld [vmem:[#allocation6 + $0x800] sm:$0xff]  ;;  %v390_v30 = vld [vmem:[#allocation6 + $0x868] sm:$0xff] }
 0x103   :  { %1067 = vmatmul.mubr.f32.gmra.mrb[26].mxu1 %v2867_v50  ;;  %2110 = vmatpush1.bf16.msra.mxu0 %v2109_v51  ;;  %v323_v51 = vld [vmem:[#allocation6 + $0x650] sm:$0xff] }
 0x104   :  { %750 = vmatprep.mubr.f32.mxu0 %v3153_v22  ;;  %1072 = vmatprep.mubr.f32.mxu1 %v3153_v22 }
 0x105   :  { %2112 = vmatprep.subr.bf16.mxu0 %v2111_v60  ;;  %v2121_v60 = vpack.c.bf16 %v323_v51, %v317_v48  ;;  %v360_v48 = vld [vmem:[#allocation6 + $0x778] sm:$0xff]  ;;  %v353_v51 = vld [vmem:[#allocation6 + $0x740] sm:$0xff] }
 0x106   :  { %751 = vmatmul.mubr.f32.gmra.mrb[28].mxu0 %v2873_v25 }
 0x107   :  { %1073 = vmatmul.mubr.f32.gmra.mrb[28].mxu1 %v2873_v25  ;;  %2114 = vmatpush1.bf16.msra.mxu0 %v2113_v27  ;;  %v335_v27 = vld [vmem:[#allocation6 + $0x6b0] sm:$0xff] }
 0x108   :  { %756 = vmatprep.mubr.f32.mxu0 %v3153_v22  ;;  %1078 = vmatprep.mubr.f32.mxu1 %v3153_v22  ;;  %v347_v22 = vld [vmem:[#allocation6 + $0x710] sm:$0xff] }
 0x109   :  { %2116 = vmatprep.subr.bf16.mxu0 %v2115_v33  ;;  %v2125_v33 = vpack.c.bf16 %v335_v27, %v329_v20  ;;  %v378_v20 = vld [vmem:[#allocation6 + $0x808] sm:$0xff] }
 0x10a   :  { %757 = vmatmul.mubr.f32.gmra.mrb[30].mxu0 %v2879_v40 }
 0x10b   :  { %1079 = vmatmul.mubr.f32.gmra.mrb[30].mxu1 %v2879_v40  ;;  %2118 = vmatpush1.bf16.msra.mxu0 %v2117_v46  ;;  %v354_v46 = vld [vmem:[#allocation6 + $0x748] sm:$0xff] }
 0x10c   :  { %1149 = vmatprep.mubr.f32.mxu0 %v2661_v16  ;;  %2120 = vmatprep.subr.bf16.mxu0 %v2119_v47  ;;  %v2129_v16 = vpack.c.bf16 %v347_v22, %v341_v38  ;;  %v2131_v47 = vpack.c.bf16 %v360_v48, %v354_v46  ;;  %v389_v38 = vld [vmem:[#allocation6 + $0x860] sm:$0xff]  ;;  %v402_v46 = vld [vmem:[#allocation6 + $0x8c8] sm:$0xff] }
 0x10e   :  { %1150 = vmatmul.mubr.f32.vlgmr.msra.gmra.mrb[32].mxu0 %v2665_v13  ;;  %v359_v13 = vld [vmem:[#allocation6 + $0x770] sm:$0xff] }
 0x10f   :  { %2122 = vmatpush1.bf16.msra.mxu0 %v2121_v60  ;;  %1155 = vmatprep.mubr.f32.mxu0 %v2667_v18  ;;  %v2133_v18 = vpack.c.bf16 %v359_v13, %v353_v51  ;;  %v2135_v60 = vpack.c.bf16 %v372_v58, %v366_v54 }
 0x110   :  { %2124 = vmatprep.subr.bf16.mxu0 %v2123_v61  ;;  %v365_v61 = vld [vmem:[#allocation6 + $0x7a0] sm:$0xff] }
 0x112   :  { %1156 = vmatmul.mubr.f32.gmra.mrb[34].mxu0 %v2671_v28  ;;  %v371_v28 = vld [vmem:[#allocation6 + $0x7d0] sm:$0xff] }
 0x113   :  { %1161 = vmatprep.mubr.f32.mxu0 %v2675_v31  ;;  %2126 = vmatpush1.bf16.msra.mxu0 %v2125_v33  ;;  %v384_v31 = vld [vmem:[#allocation6 + $0x838] sm:$0xff]  ;;  %v2137_v22 = vpack.c.bf16 %v371_v28, %v365_v61 }
 0x114   :  { %2128 = vmatprep.subr.bf16.mxu0 %v2127_v37  ;;  %v2139_v27 = vpack.c.bf16 %v384_v31, %v378_v20 }
 0x116   :  { %1162 = vmatmul.mubr.f32.gmra.mrb[36].mxu0 %v2680_v42  ;;  %v383_v42 = vld [vmem:[#allocation6 + $0x830] sm:$0xff] }
 0x117   :  { %1167 = vmatprep.mubr.f32.mxu0 %v2683_v45  ;;  %2130 = vmatpush1.bf16.msra.mxu0 %v2129_v16  ;;  %v396_v45 = vld [vmem:[#allocation6 + $0x898] sm:$0xff]  ;;  %v2141_v33 = vpack.c.bf16 %v383_v42, %v377_v29 }
 0x118   :  { %2132 = vmatprep.subr.bf16.mxu0 %v2131_v47  ;;  %v2143_v37 = vpack.c.bf16 %v396_v45, %v390_v30  ;;  %v401_v47 = vld [vmem:[#allocation6 + $0x8c0] sm:$0xff] }
 0x11a   :  { %1168 = vmatmul.mubr.f32.gmra.mrb[38].mxu0 %v2688_v56  ;;  %v395_v56 = vld [vmem:[#allocation6 + $0x890] sm:$0xff] }
 0x11b   :  { %1173 = vmatprep.mubr.f32.mxu0 %v2691_v59  ;;  %2134 = vmatpush1.bf16.msra.mxu0 %v2133_v18  ;;  %v408_v59 = vld [vmem:[#allocation6 + $0x8f8] sm:$0xff]  ;;  %v2145_v48 = vpack.c.bf16 %v395_v56, %v389_v38 }
 0x11c   :  { %2136 = vmatprep.subr.bf16.mxu0 %v2135_v60  ;;  %v2147_v16 = vpack.c.bf16 %v408_v59, %v402_v46 }
 0x11e   :  { %1174 = vmatmul.mubr.f32.gmra.mrb[40].mxu0 %v2696_v6  ;;  %v407_v6 = vld [vmem:[#allocation6 + $0x8f0] sm:$0xff] }
 0x11f   :  { %1179 = vmatprep.mubr.f32.mxu0 %v2699_v9  ;;  %2138 = vmatpush1.bf16.msra.mxu0 %v2137_v22  ;;  %v2149_v9 = vpack.c.bf16 %v407_v6, %v401_v47 }
 0x120   :  { %2140 = vmatprep.subr.bf16.mxu0 %v2139_v27 }
 0x122   :  { %1180 = vmatmul.mubr.f32.gmra.mrb[42].mxu0 %v2704_v23  ;;  %v3155_v23 = vmov 0.0  }
 0x123   :  { %1185 = vmatprep.mubr.f32.mxu0 %v2707_v26  ;;  %2142 = vmatpush1.bf16.msra.mxu0 %v2141_v33  ;;  %v411_v26 = vlaneseq }
 0x124   :  { %2144 = vmatprep.subr.bf16.mxu0 %v2143_v37 }
 0x126   :  { %1186 = vmatmul.mubr.f32.gmra.mrb[44].mxu0 %v2712_v39  ;;  %v2930_v39 = vshrl.u32 %v411_v26, 7 }
 0x127   :  { %1191 = vmatprep.mubr.f32.mxu0 %v2715_v43  ;;  %2146 = vmatpush1.bf16.msra.mxu0 %v2145_v48 }
 0x128   :  { %2148 = vmatprep.subr.bf16.mxu0 %v2147_v16  ;;  %v417_v43 = vsub.s32 1, %v2930_v39 }
 0x12a   :  { %1192 = vmatmul.mubr.f32.gmra.mrb[46].mxu0 %v2720_v55  ;;  %v2935_v55 = vld [vmem:[#allocation9] sm:$0x3f] }
 0x12b   :  { %1197 = vmatprep.mubr.f32.mxu0 %v2723_v57  ;;  %2150 = vmatpush1.bf16.msra.mxu0 %v2149_v9  ;;  %v1610_v57 = vrot.slane %v2935_v55, %v417_v43 }
 0x12d   :  { %1697 = vmatprep.mubr.f32.mxu1 %v1610_v57 }
 0x12e   :  { %1198 = vmatmul.mubr.f32.gmra.mrb[48].mxu0 %v2728_v62  ;;  %v413_v62 = vsub.s32 0, %v2930_v39 }
 0x12f   :  { %1203 = vmatprep.mubr.f32.mxu0 %v2731_v63  ;;  %v2956_v63 = vld [vmem:[#allocation8] sm:$0x3f] }
 0x132   :  { %1204 = vmatmul.mubr.f32.gmra.mrb[50].mxu0 %v2736_v0  ;;  %v421_v0 = vsub.s32 2, %v2930_v39 }
 0x133   :  { %1209 = vmatprep.mubr.f32.mxu0 %v2739_v1  ;;  %v425_v1 = vsub.s32 3, %v2930_v39 }
 0x136   :  { %1210 = vmatmul.mubr.f32.gmra.mrb[52].mxu0 %v2744_v2  ;;  %v2963_v2 = vrot.slane %v2956_v63, %v413_v62 }
 0x137   :  { %1215 = vmatprep.mubr.f32.mxu0 %v2747_v3  ;;  %v2968_v3 = vrot.slane %v2956_v63, %v421_v0 }
 0x13a   :  { %1216 = vmatmul.mubr.f32.gmra.mrb[54].mxu0 %v2752_v4  ;;  %v2971_v4 = vrot.slane %v2956_v63, %v417_v43 }
 0x13b   :  { %1221 = vmatprep.mubr.f32.mxu0 %v2755_v5  ;;  %v2976_v5 = vrot.slane %v2956_v63, %v425_v1 }
 0x13e   :  { %1222 = vmatmul.mubr.f32.gmra.mrb[56].mxu0 %v2760_v7 }
 0x13f   :  { %1227 = vmatprep.mubr.f32.mxu0 %v2763_v8 }
 0x142   :  { %1228 = vmatmul.mubr.f32.gmra.mrb[58].mxu0 %v2768_v10 }
 0x143   :  { %1233 = vmatprep.mubr.f32.mxu0 %v2771_v11 }
 0x146   :  { %1234 = vmatmul.mubr.f32.gmra.mrb[60].mxu0 %v2776_v12 }
 0x147   :  { %1239 = vmatprep.mubr.f32.mxu0 %v2779_v14 }
 0x14a   :  { %1240 = vmatmul.mubr.f32.gmra.mrb[62].mxu0 %v2784_v15 }
 0x14b   :  { %1310 = vmatprep.mubr.f32.mxu0 %v3155_v23 }
 0x14e   :  { %1311 = vmatmul.mubr.f32.vlgmr.msra.gmra.mrb[32].mxu0 %v2790_v24 }
 0x14f   :  { %1316 = vmatprep.mubr.f32.mxu0 %v3155_v23 }
 0x152   :  { %1317 = vmatmul.mubr.f32.gmra.mrb[34].mxu0 %v2795_v34 }
 0x153   :  { %1322 = vmatprep.mubr.f32.mxu0 %v3155_v23 }
 0x156   :  { %1323 = vmatmul.mubr.f32.gmra.mrb[36].mxu0 %v2801_v44 }
 0x157   :  { %1328 = vmatprep.mubr.f32.mxu0 %v3155_v23 }
 0x15a   :  { %1329 = vmatmul.mubr.f32.gmra.mrb[38].mxu0 %v2807_v52 }
 0x15b   :  { %1334 = vmatprep.mubr.f32.mxu0 %v3155_v23 }
 0x15e   :  { %1335 = vmatmul.mubr.f32.gmra.mrb[40].mxu0 %v2813_v19 }
 0x15f   :  { %1340 = vmatprep.mubr.f32.mxu0 %v3155_v23 }
 0x162   :  { %1341 = vmatmul.mubr.f32.gmra.mrb[42].mxu0 %v2819_v32 }
 0x163   :  { %1346 = vmatprep.mubr.f32.mxu0 %v3155_v23 }
 0x166   :  { %1347 = vmatmul.mubr.f32.gmra.mrb[44].mxu0 %v2825_v41 }
 0x167   :  { %1352 = vmatprep.mubr.f32.mxu0 %v3155_v23 }
 0x16a   :  { %1353 = vmatmul.mubr.f32.gmra.mrb[46].mxu0 %v2831_v53 }
 0x16b   :  { %1358 = vmatprep.mubr.f32.mxu0 %v3155_v23 }
 0x16e   :  { %1359 = vmatmul.mubr.f32.gmra.mrb[48].mxu0 %v2837_v21 }
 0x16f   :  { %1364 = vmatprep.mubr.f32.mxu0 %v3155_v23 }
 0x172   :  { %1365 = vmatmul.mubr.f32.gmra.mrb[50].mxu0 %v2843_v36 }
 0x173   :  { %1370 = vmatprep.mubr.f32.mxu0 %v3155_v23 }
 0x176   :  { %1371 = vmatmul.mubr.f32.gmra.mrb[52].mxu0 %v2849_v49 }
 0x177   :  { %1376 = vmatprep.mubr.f32.mxu0 %v3155_v23 }
 0x17a   :  { %1377 = vmatmul.mubr.f32.gmra.mrb[54].mxu0 %v2855_v17 }
 0x17b   :  { %1382 = vmatprep.mubr.f32.mxu0 %v3155_v23 }
 0x17e   :  { %1383 = vmatmul.mubr.f32.gmra.mrb[56].mxu0 %v2861_v35 }
 0x17f   :  { %1388 = vmatprep.mubr.f32.mxu0 %v3155_v23 }
 0x182   :  { %1389 = vmatmul.mubr.f32.gmra.mrb[58].mxu0 %v2867_v50 }
 0x183   :  { %1394 = vmatprep.mubr.f32.mxu0 %v3155_v23 }
 0x186   :  { %1395 = vmatmul.mubr.f32.gmra.mrb[60].mxu0 %v2873_v25 }
 0x187   :  { %1400 = vmatprep.mubr.f32.mxu0 %v3155_v23 }
 0x18a   :  { %1401 = vmatmul.mubr.f32.gmra.mrb[62].mxu0 %v2879_v40 }
 0x1a1   :  { %v668_v7 = vpop.f32.mrb[0].mxu0 }
 0x1a2   :  { %v2247_v8 = vadd.f32 %v668_v7, %v2963_v2  ;;  %v990_v10 = vpop.f32.mrb[0].mxu1  ;;  %v670_v11 = vpop.f32.mrb[1].mxu0 }
 0x1a3   :  { %v2279_v12 = vadd.f32 %v990_v10, %v2968_v3  ;;  %v2248_v14 = vadd.f32 %v670_v11, %v2971_v4  ;;  %v992_v15 = vpop.f32.mrb[1].mxu1 }
 0x1a4   :  { %v2280_v24 = vadd.f32 %v992_v15, %v2976_v5  ;;  %v1407_v34 = vmul.f32 0.01, %v2247_v8 }
 0x1a5   :  { %v1409_v44 = vmul.f32 0.01, %v2279_v12  ;;  %v674_v52 = vpop.f32.mrb[2].mxu0  ;;  %v1408_v19 = vmul.f32 0.01, %v2248_v14 }
 0x1a6   :  { %v2249_v32 = vadd.f32 %v674_v52, %v2963_v2  ;;  %v996_v41 = vpop.f32.mrb[2].mxu1  ;;  %v676_v53 = vpop.f32.mrb[3].mxu0  ;;  %v1410_v17 = vmul.f32 0.01, %v2280_v24  ;;  %v1503_v25 = vmax.f32 %v2247_v8, %v1407_v34 }
 0x1a7   :  { %v2281_v21 = vadd.f32 %v996_v41, %v2968_v3  ;;  %v2250_v36 = vadd.f32 %v676_v53, %v2971_v4  ;;  %v998_v49 = vpop.f32.mrb[3].mxu1  ;;  %v1505_v40 = vmax.f32 %v2279_v12, %v1409_v44  ;;  %v1504_v58 = vmax.f32 %v2248_v14, %v1408_v19 }
 0x1a8   :  { %v1413_v35 = vmul.f32 0.01, %v2249_v32  ;;  %v2282_v50 = vadd.f32 %v998_v49, %v2976_v5  ;;  %v1506_v30 = vmax.f32 %v2280_v24, %v1410_v17 }
 0x1a9   :  { %v1415_v51 = vmul.f32 0.01, %v2281_v21  ;;  %v1414_v13 = vmul.f32 0.01, %v2250_v36  ;;  %v680_v54 = vpop.f32.mrb[4].mxu0 }
 0x1aa   :  { %v1509_v18 = vmax.f32 %v2249_v32, %v1413_v35  ;;  %v1416_v60 = vmul.f32 0.01, %v2282_v50  ;;  %v2251_v61 = vadd.f32 %v680_v54, %v2963_v2  ;;  %v1002_v28 = vpop.f32.mrb[4].mxu1  ;;  %v682_v20 = vpop.f32.mrb[5].mxu0 }
 0x1ab   :  { %v1511_v31 = vmax.f32 %v2281_v21, %v1415_v51  ;;  %v1510_v22 = vmax.f32 %v2250_v36, %v1414_v13  ;;  %v2283_v27 = vadd.f32 %v1002_v28, %v2968_v3  ;;  %v2252_v29 = vadd.f32 %v682_v20, %v2971_v4  ;;  %v1004_v42 = vpop.f32.mrb[5].mxu1 }
 0x1ac   :  { %v2153_v45 = vpack.c.bf16 %v1509_v18, %v1503_v25  ;;  %v1512_v33 = vmax.f32 %v2282_v50, %v1416_v60  ;;  %v2284_v37 = vadd.f32 %v1004_v42, %v2976_v5  ;;  %v1419_v56 = vmul.f32 0.01, %v2251_v61 }
 0x1ad   :  { %v2990_v38 = vpack.c.bf16 %v1511_v31, %v1505_v40  ;;  %v1421_v46 = vmul.f32 0.01, %v2283_v27  ;;  %v686_v59 = vpop.f32.mrb[6].mxu0  ;;  %v2151_v48 = vpack.c.bf16 %v1510_v22, %v1504_v58  ;;  %v1420_v16 = vmul.f32 0.01, %v2252_v29 }
 0x1ae   :  { %v2253_v47 = vadd.f32 %v686_v59, %v2963_v2  ;;  %v1008_v6 = vpop.f32.mrb[6].mxu1  ;;  %v688_v9 = vpop.f32.mrb[7].mxu0  ;;  %v2993_v23 = vpack.c.bf16 %v1512_v33, %v1506_v30  ;;  %v1422_v7 = vmul.f32 0.01, %v2284_v37  ;;  %v1515_v11 = vmax.f32 %v2251_v61, %v1419_v56 }
 0x1af   :  { %v2285_v26 = vadd.f32 %v1008_v6, %v2968_v3  ;;  %v2254_v43 = vadd.f32 %v688_v9, %v2971_v4  ;;  %v1010_v57 = vpop.f32.mrb[7].mxu1  ;;  %2152 = vmatprep.subr.bf16.mxu1 %v2151_v48  ;;  %v1517_v12 = vmax.f32 %v2283_v27, %v1421_v46  ;;  %v1516_v34 = vmax.f32 %v2252_v29, %v1420_v16 }
 0x1b0   :  { %v1425_v8 = vmul.f32 0.01, %v2253_v47  ;;  %v2286_v10 = vadd.f32 %v1010_v57, %v2976_v5  ;;  %2154 = vmatpush1.bf16.xpose.msra.mxu1 %v2153_v45  ;;  %v1518_v35 = vmax.f32 %v2284_v37, %v1422_v7 }
 0x1b1   :  { %v1427_v14 = vmul.f32 0.01, %v2285_v26  ;;  %v1426_v15 = vmul.f32 0.01, %v2254_v43  ;;  %v692_v24 = vpop.f32.mrb[8].mxu0 }
 0x1b2   :  { %v1521_v44 = vmax.f32 %v2253_v47, %v1425_v8  ;;  %v1428_v52 = vmul.f32 0.01, %v2286_v10  ;;  %v2255_v19 = vadd.f32 %v692_v24, %v2963_v2  ;;  %v1014_v32 = vpop.f32.mrb[8].mxu1  ;;  %v694_v41 = vpop.f32.mrb[9].mxu0 }
 0x1b3   :  { %v1523_v53 = vmax.f32 %v2285_v26, %v1427_v14  ;;  %v1522_v21 = vmax.f32 %v2254_v43, %v1426_v15  ;;  %v2287_v36 = vadd.f32 %v1014_v32, %v2968_v3  ;;  %v2256_v49 = vadd.f32 %v694_v41, %v2971_v4  ;;  %v1016_v17 = vpop.f32.mrb[9].mxu1 }
 0x1b4   :  { %v2157_v50 = vpack.c.bf16 %v1521_v44, %v1515_v11  ;;  %v1524_v25 = vmax.f32 %v2286_v10, %v1428_v52  ;;  %v2288_v40 = vadd.f32 %v1016_v17, %v2976_v5  ;;  %v1431_v13 = vmul.f32 0.01, %v2255_v19 }
 0x1b5   :  { %v3002_v51 = vpack.c.bf16 %v1523_v53, %v1517_v12  ;;  %v1433_v54 = vmul.f32 0.01, %v2287_v36  ;;  %v698_v58 = vpop.f32.mrb[10].mxu0  ;;  %v2155_v18 = vpack.c.bf16 %v1522_v21, %v1516_v34  ;;  %v1432_v60 = vmul.f32 0.01, %v2256_v49 }
 0x1b6   :  { %v2257_v61 = vadd.f32 %v698_v58, %v2963_v2  ;;  %v1020_v28 = vpop.f32.mrb[10].mxu1  ;;  %v700_v20 = vpop.f32.mrb[11].mxu0  ;;  %v3005_v31 = vpack.c.bf16 %v1524_v25, %v1518_v35  ;;  %v1434_v42 = vmul.f32 0.01, %v2288_v40  ;;  %v1527_v33 = vmax.f32 %v2255_v19, %v1431_v13 }
 0x1b7   :  { %v2289_v22 = vadd.f32 %v1020_v28, %v2968_v3  ;;  %v2258_v27 = vadd.f32 %v700_v20, %v2971_v4  ;;  %v1022_v29 = vpop.f32.mrb[11].mxu1  ;;  %2156 = vmatprep.subr.bf16.mxu1 %v2155_v18  ;;  %v1529_v37 = vmax.f32 %v2287_v36, %v1433_v54  ;;  %v1528_v48 = vmax.f32 %v2256_v49, %v1432_v60 }
 0x1b8   :  { %v1437_v30 = vmul.f32 0.01, %v2257_v61  ;;  %v2290_v45 = vadd.f32 %v1022_v29, %v2976_v5  ;;  %2158 = vmatpush1.bf16.xpose.msra.mxu1 %v2157_v50  ;;  %v1530_v11 = vmax.f32 %v2288_v40, %v1434_v42 }
 0x1b9   :  { %v1439_v56 = vmul.f32 0.01, %v2289_v22  ;;  %v1438_v46 = vmul.f32 0.01, %v2258_v27  ;;  %v704_v59 = vpop.f32.mrb[12].mxu0 }
 0x1ba   :  { %v1533_v16 = vmax.f32 %v2257_v61, %v1437_v30  ;;  %v1440_v47 = vmul.f32 0.01, %v2290_v45  ;;  %v2259_v6 = vadd.f32 %v704_v59, %v2963_v2  ;;  %v1026_v9 = vpop.f32.mrb[12].mxu1  ;;  %v706_v26 = vpop.f32.mrb[13].mxu0 }
 0x1bb   :  { %v1535_v43 = vmax.f32 %v2289_v22, %v1439_v56  ;;  %v1534_v57 = vmax.f32 %v2258_v27, %v1438_v46  ;;  %v2291_v7 = vadd.f32 %v1026_v9, %v2968_v3  ;;  %v2260_v8 = vadd.f32 %v706_v26, %v2971_v4  ;;  %v1028_v10 = vpop.f32.mrb[13].mxu1 }
 0x1bc   :  { %v2161_v12 = vpack.c.bf16 %v1533_v16, %v1527_v33  ;;  %v1536_v14 = vmax.f32 %v2290_v45, %v1440_v47  ;;  %v2292_v15 = vadd.f32 %v1028_v10, %v2976_v5  ;;  %v1443_v34 = vmul.f32 0.01, %v2259_v6 }
 0x1bd   :  { %v3014_v24 = vpack.c.bf16 %v1535_v43, %v1529_v37  ;;  %v1445_v44 = vmul.f32 0.01, %v2291_v7  ;;  %v710_v52 = vpop.f32.mrb[14].mxu0  ;;  %v2159_v19 = vpack.c.bf16 %v1534_v57, %v1528_v48  ;;  %v1444_v32 = vmul.f32 0.01, %v2260_v8 }
 0x1be   :  { %v2261_v41 = vadd.f32 %v710_v52, %v2963_v2  ;;  %v1032_v53 = vpop.f32.mrb[14].mxu1  ;;  %v712_v21 = vpop.f32.mrb[15].mxu0  ;;  %v3017_v36 = vpack.c.bf16 %v1536_v14, %v1530_v11  ;;  %v1446_v50 = vmul.f32 0.01, %v2292_v15  ;;  %v1539_v13 = vmax.f32 %v2259_v6, %v1443_v34 }
 0x1bf   :  { %v2293_v49 = vadd.f32 %v1032_v53, %v2968_v3  ;;  %v2262_v17 = vadd.f32 %v712_v21, %v2971_v4  ;;  %v1034_v35 = vpop.f32.mrb[15].mxu1  ;;  %2160 = vmatprep.subr.bf16.mxu1 %v2159_v19  ;;  %v1541_v54 = vmax.f32 %v2291_v7, %v1445_v44  ;;  %v1540_v61 = vmax.f32 %v2260_v8, %v1444_v32 }
 0x1c0   :  { %v1449_v25 = vmul.f32 0.01, %v2261_v41  ;;  %v2294_v40 = vadd.f32 %v1034_v35, %v2976_v5  ;;  %2162 = vmatpush1.bf16.xpose.msra.mxu1 %v2161_v12  ;;  %v1542_v56 = vmax.f32 %v2292_v15, %v1446_v50 }
 0x1c1   :  { %v1451_v58 = vmul.f32 0.01, %v2293_v49  ;;  %v1450_v18 = vmul.f32 0.01, %v2262_v17  ;;  %v716_v60 = vpop.f32.mrb[16].mxu0 }
 0x1c2   :  { %v1545_v28 = vmax.f32 %v2261_v41, %v1449_v25  ;;  %v1452_v20 = vmul.f32 0.01, %v2294_v40  ;;  %v2263_v22 = vadd.f32 %v716_v60, %v2963_v2  ;;  %v1038_v27 = vpop.f32.mrb[16].mxu1  ;;  %v718_v29 = vpop.f32.mrb[17].mxu0 }
 0x1c3   :  { %v1547_v42 = vmax.f32 %v2293_v49, %v1451_v58  ;;  %v1546_v30 = vmax.f32 %v2262_v17, %v1450_v18  ;;  %v2295_v45 = vadd.f32 %v1038_v27, %v2968_v3  ;;  %v2264_v33 = vadd.f32 %v718_v29, %v2971_v4  ;;  %v1040_v37 = vpop.f32.mrb[17].mxu1 }
 0x1c4   :  { %v2165_v46 = vpack.c.bf16 %v1545_v28, %v1539_v13  ;;  %v1548_v59 = vmax.f32 %v2294_v40, %v1452_v20  ;;  %v2296_v48 = vadd.f32 %v1040_v37, %v2976_v5  ;;  %v1455_v47 = vmul.f32 0.01, %v2263_v22 }
 0x1c5   :  { %v3026_v16 = vpack.c.bf16 %v1547_v42, %v1541_v54  ;;  %v1457_v6 = vmul.f32 0.01, %v2295_v45  ;;  %v722_v9 = vpop.f32.mrb[18].mxu0  ;;  %v2163_v26 = vpack.c.bf16 %v1546_v30, %v1540_v61  ;;  %v1456_v43 = vmul.f32 0.01, %v2264_v33 }
 0x1c6   :  { %v2265_v57 = vadd.f32 %v722_v9, %v2963_v2  ;;  %v1044_v7 = vpop.f32.mrb[18].mxu1  ;;  %v724_v8 = vpop.f32.mrb[19].mxu0  ;;  %v3029_v10 = vpack.c.bf16 %v1548_v59, %v1542_v56  ;;  %v1458_v15 = vmul.f32 0.01, %v2296_v48  ;;  %v1551_v52 = vmax.f32 %v2263_v22, %v1455_v47 }
 0x1c7   :  { %v2297_v11 = vadd.f32 %v1044_v7, %v2968_v3  ;;  %v2266_v12 = vadd.f32 %v724_v8, %v2971_v4  ;;  %v1046_v14 = vpop.f32.mrb[19].mxu1  ;;  %2164 = vmatprep.subr.bf16.mxu1 %v2163_v26  ;;  %v1553_v19 = vmax.f32 %v2295_v45, %v1457_v6  ;;  %v1552_v21 = vmax.f32 %v2264_v33, %v1456_v43 }
 0x1c8   :  { %v1461_v34 = vmul.f32 0.01, %v2265_v57  ;;  %v2298_v44 = vadd.f32 %v1046_v14, %v2976_v5  ;;  %2166 = vmatpush1.bf16.xpose.msra.mxu1 %v2165_v46  ;;  %v1554_v60 = vmax.f32 %v2296_v48, %v1458_v15 }
 0x1c9   :  { %v1463_v32 = vmul.f32 0.01, %v2297_v11  ;;  %v1462_v41 = vmul.f32 0.01, %v2266_v12  ;;  %v728_v53 = vpop.f32.mrb[20].mxu0 }
 0x1ca   :  { %v1557_v49 = vmax.f32 %v2265_v57, %v1461_v34  ;;  %v1464_v17 = vmul.f32 0.01, %v2298_v44  ;;  %v2267_v35 = vadd.f32 %v728_v53, %v2963_v2  ;;  %v1050_v50 = vpop.f32.mrb[20].mxu1  ;;  %v730_v25 = vpop.f32.mrb[21].mxu0 }
 0x1cb   :  { %v1559_v40 = vmax.f32 %v2297_v11, %v1463_v32  ;;  %v1558_v13 = vmax.f32 %v2266_v12, %v1462_v41  ;;  %v2299_v54 = vadd.f32 %v1050_v50, %v2968_v3  ;;  %v2268_v58 = vadd.f32 %v730_v25, %v2971_v4  ;;  %v1052_v18 = vpop.f32.mrb[21].mxu1 }
 0x1cc   :  { %v2169_v61 = vpack.c.bf16 %v1557_v49, %v1551_v52  ;;  %v1560_v28 = vmax.f32 %v2298_v44, %v1464_v17  ;;  %v2300_v20 = vadd.f32 %v1052_v18, %v2976_v5  ;;  %v1467_v27 = vmul.f32 0.01, %v2267_v35 }
 0x1cd   :  { %v3038_v22 = vpack.c.bf16 %v1559_v40, %v1553_v19  ;;  %v1469_v29 = vmul.f32 0.01, %v2299_v54  ;;  %v734_v42 = vpop.f32.mrb[22].mxu0  ;;  %v2167_v30 = vpack.c.bf16 %v1558_v13, %v1552_v21  ;;  %v1468_v45 = vmul.f32 0.01, %v2268_v58 }
 0x1ce   :  { %v2269_v33 = vadd.f32 %v734_v42, %v2963_v2  ;;  %v1056_v37 = vpop.f32.mrb[22].mxu1  ;;  %v736_v56 = vpop.f32.mrb[23].mxu0  ;;  %v3041_v46 = vpack.c.bf16 %v1560_v28, %v1554_v60  ;;  %v1470_v6 = vmul.f32 0.01, %v2300_v20  ;;  %v1563_v43 = vmax.f32 %v2267_v35, %v1467_v27 }
 0x1cf   :  { %v2301_v59 = vadd.f32 %v1056_v37, %v2968_v3  ;;  %v2270_v48 = vadd.f32 %v736_v56, %v2971_v4  ;;  %v1058_v47 = vpop.f32.mrb[23].mxu1  ;;  %2168 = vmatprep.subr.bf16.mxu1 %v2167_v30  ;;  %v1565_v57 = vmax.f32 %v2299_v54, %v1469_v29  ;;  %v1564_v12 = vmax.f32 %v2268_v58, %v1468_v45 }
 0x1d0   :  { %v1473_v9 = vmul.f32 0.01, %v2269_v33  ;;  %v2302_v26 = vadd.f32 %v1058_v47, %v2976_v5  ;;  %2170 = vmatpush1.bf16.xpose.msra.mxu1 %v2169_v61  ;;  %v1566_v49 = vmax.f32 %v2300_v20, %v1470_v6 }
 0x1d1   :  { %v1475_v7 = vmul.f32 0.01, %v2301_v59  ;;  %v1474_v8 = vmul.f32 0.01, %v2270_v48  ;;  %v740_v11 = vpop.f32.mrb[24].mxu0 }
 0x1d2   :  { %v1569_v14 = vmax.f32 %v2269_v33, %v1473_v9  ;;  %v1476_v15 = vmul.f32 0.01, %v2302_v26  ;;  %v2271_v34 = vadd.f32 %v740_v11, %v2963_v2  ;;  %v1062_v44 = vpop.f32.mrb[24].mxu1  ;;  %v742_v52 = vpop.f32.mrb[25].mxu0 }
 0x1d3   :  { %v1571_v19 = vmax.f32 %v2301_v59, %v1475_v7  ;;  %v1570_v32 = vmax.f32 %v2270_v48, %v1474_v8  ;;  %v2303_v41 = vadd.f32 %v1062_v44, %v2968_v3  ;;  %v2272_v53 = vadd.f32 %v742_v52, %v2971_v4  ;;  %v1064_v21 = vpop.f32.mrb[25].mxu1 }
 0x1d4   :  { %v2173_v17 = vpack.c.bf16 %v1569_v14, %v1563_v43  ;;  %v1572_v35 = vmax.f32 %v2302_v26, %v1476_v15  ;;  %v2304_v50 = vadd.f32 %v1064_v21, %v2976_v5  ;;  %v1479_v40 = vmul.f32 0.01, %v2271_v34 }
 0x1d5   :  { %v3050_v25 = vpack.c.bf16 %v1571_v19, %v1565_v57  ;;  %v1481_v13 = vmul.f32 0.01, %v2303_v41  ;;  %v746_v54 = vpop.f32.mrb[26].mxu0  ;;  %v2171_v58 = vpack.c.bf16 %v1570_v32, %v1564_v12  ;;  %v1480_v18 = vmul.f32 0.01, %v2272_v53 }
 0x1d6   :  { %v2273_v60 = vadd.f32 %v746_v54, %v2963_v2  ;;  %v1068_v61 = vpop.f32.mrb[26].mxu1  ;;  %v748_v28 = vpop.f32.mrb[27].mxu0  ;;  %v3053_v27 = vpack.c.bf16 %v1572_v35, %v1566_v49  ;;  %v1482_v30 = vmul.f32 0.01, %v2304_v50  ;;  %v1575_v37 = vmax.f32 %v2271_v34, %v1479_v40 }
 0x1d7   :  { %v2305_v29 = vadd.f32 %v1068_v61, %v2968_v3  ;;  %v2274_v20 = vadd.f32 %v748_v28, %v2971_v4  ;;  %v1070_v42 = vpop.f32.mrb[27].mxu1  ;;  %2172 = vmatprep.subr.bf16.mxu1 %v2171_v58  ;;  %v1577_v56 = vmax.f32 %v2303_v41, %v1481_v13  ;;  %v1576_v6 = vmax.f32 %v2272_v53, %v1480_v18 }
 0x1d8   :  { %v1485_v45 = vmul.f32 0.01, %v2273_v60  ;;  %v2306_v33 = vadd.f32 %v1070_v42, %v2976_v5  ;;  %2174 = vmatpush1.bf16.xpose.msra.mxu1 %v2173_v17  ;;  %v1578_v44 = vmax.f32 %v2304_v50, %v1482_v30 }
 0x1d9   :  { %v1487_v59 = vmul.f32 0.01, %v2305_v29  ;;  %v1486_v48 = vmul.f32 0.01, %v2274_v20  ;;  %v752_v47 = vpop.f32.mrb[28].mxu0 }
 0x1da   :  { %v1581_v9 = vmax.f32 %v2273_v60, %v1485_v45  ;;  %v1488_v26 = vmul.f32 0.01, %v2306_v33  ;;  %v2275_v43 = vadd.f32 %v752_v47, %v2963_v2  ;;  %v1074_v57 = vpop.f32.mrb[28].mxu1  ;;  %v754_v7 = vpop.f32.mrb[29].mxu0 }
 0x1db   :  { %v1583_v8 = vmax.f32 %v2305_v29, %v1487_v59  ;;  %v1582_v11 = vmax.f32 %v2274_v20, %v1486_v48  ;;  %v2307_v12 = vadd.f32 %v1074_v57, %v2968_v3  ;;  %v2276_v14 = vadd.f32 %v754_v7, %v2971_v4  ;;  %v1076_v15 = vpop.f32.mrb[29].mxu1 }
 0x1dc   :  { %v2177_v34 = vpack.c.bf16 %v1581_v9, %v1575_v37  ;;  %v1584_v52 = vmax.f32 %v2306_v33, %v1488_v26  ;;  %v2308_v19 = vadd.f32 %v1076_v15, %v2976_v5  ;;  %v1491_v21 = vmul.f32 0.01, %v2275_v43 }
 0x1dd   :  { %v2209_v32 = vpack.c.bf16 %v1583_v8, %v1577_v56  ;;  %v758_v41 = vpop.f32.mrb[30].mxu0  ;;  %v2175_v53 = vpack.c.bf16 %v1582_v11, %v1576_v6  ;;  %v1493_v13 = vmul.f32 0.01, %v2307_v12  ;;  %v1492_v54 = vmul.f32 0.01, %v2276_v14 }
 0x1de   :  { %v2277_v49 = vadd.f32 %v758_v41, %v2963_v2  ;;  %v1080_v17 = vpop.f32.mrb[30].mxu1  ;;  %v760_v35 = vpop.f32.mrb[31].mxu0  ;;  %v2207_v40 = vpack.c.bf16 %v1584_v52, %v1578_v44  ;;  %v1494_v60 = vmul.f32 0.01, %v2308_v19  ;;  %v1587_v42 = vmax.f32 %v2275_v43, %v1491_v21 }
 0x1df   :  { %v2309_v58 = vadd.f32 %v1080_v17, %v2968_v3  ;;  %v2278_v18 = vadd.f32 %v760_v35, %v2971_v4  ;;  %v1082_v50 = vpop.f32.mrb[31].mxu1  ;;  %2176 = vmatprep.subr.bf16.mxu1 %v2175_v53  ;;  %v1589_v45 = vmax.f32 %v2307_v12, %v1493_v13  ;;  %v1588_v33 = vmax.f32 %v2276_v14, %v1492_v54 }
 0x1e0   :  { %v1497_v61 = vmul.f32 0.01, %v2277_v49  ;;  %v2310_v28 = vadd.f32 %v1082_v50, %v2976_v5  ;;  %2178 = vmatpush1.bf16.xpose.msra.mxu1 %v2177_v34  ;;  %v1590_v59 = vmax.f32 %v2308_v19, %v1494_v60  ;;  %v1606_v5 = vrot.slane %v2935_v55, %v413_v62 }
 0x1e1   :  { %v1499_v29 = vmul.f32 0.01, %v2309_v58  ;;  %v1498_v20 = vmul.f32 0.01, %v2278_v18  ;;  %v1618_v9 = vrot.slane %v2935_v55, %v425_v1  ;;  %v429_v62 = vsub.s32 4, %v2930_v39 }
 0x1e2   :  { %v1593_v2 = vmax.f32 %v2277_v49, %v1497_v61  ;;  %v1500_v30 = vmul.f32 0.01, %v2310_v28  ;;  %v433_v1 = vsub.s32 5, %v2930_v39  ;;  %v1614_v44 = vrot.slane %v2935_v55, %v421_v0 }
 0x1e3   :  { %v1595_v37 = vmax.f32 %v2309_v58, %v1499_v29  ;;  %v1594_v56 = vmax.f32 %v2278_v18, %v1498_v20 }
 0x1e4   :  { %v2181_v3 = vpack.c.bf16 %v1593_v2, %v1587_v42  ;;  %v1596_v48 = vmax.f32 %v2310_v28, %v1500_v30  ;;  %v1626_v52 = vrot.slane %v2935_v55, %v433_v1 }
 0x1e5   :  { %v2213_v4 = vpack.c.bf16 %v1595_v37, %v1589_v45  ;;  %v2179_v47 = vpack.c.bf16 %v1594_v56, %v1588_v33 }
 0x1e6   :  { %v2211_v6 = vpack.c.bf16 %v1596_v48, %v1590_v59 }
 0x1e7   :  { %2180 = vmatprep.subr.bf16.mxu1 %v2179_v47 }
 0x1e8   :  { %2182 = vmatpush1.bf16.xpose.msra.mxu1 %v2181_v3 }
 0x1e9   :  { %2184 = vmatprep.subr.bf16.mxu1 %v2993_v23  ;;  %v3092_v23 = vrot.slane %v2956_v63, %v433_v1 }
 0x1ef   :  { %1698 = vmatmul.mubr.f32.vlgmr.msra.gmra.mrb[32].mxu1 %v1606_v5 }
 0x1f0   :  { %2186 = vmatpush1.bf16.xpose.msra.mxu1 %v2990_v38  ;;  %1767 = vmatprep.mubr.f32.mxu1 %v1618_v9  ;;  %v3089_v38 = vrot.slane %v2956_v63, %v429_v62 }
 0x1f1   :  { %2188 = vmatprep.subr.bf16.mxu1 %v3005_v31 }
 0x1f8   :  { %2190 = vmatpush1.bf16.xpose.msra.mxu1 %v3002_v51 }
 0x1f9   :  { %2192 = vmatprep.subr.bf16.mxu1 %v3017_v36 }
 0x200   :  { %2194 = vmatpush1.bf16.xpose.msra.mxu1 %v3014_v24 }
 0x201   :  { %2196 = vmatprep.subr.bf16.mxu1 %v3029_v10 }
 0x208   :  { %2198 = vmatpush1.bf16.xpose.msra.mxu1 %v3026_v16 }
 0x209   :  { %2200 = vmatprep.subr.bf16.mxu1 %v3041_v46 }
 0x210   :  { %2202 = vmatpush1.bf16.xpose.msra.mxu1 %v3038_v22 }
 0x211   :  { %2204 = vmatprep.subr.bf16.mxu1 %v3053_v27 }
 0x218   :  { %2206 = vmatpush1.bf16.xpose.msra.mxu1 %v3050_v25 }
 0x219   :  { %2208 = vmatprep.subr.bf16.mxu1 %v2207_v40 }
 0x220   :  { %2210 = vmatpush1.bf16.xpose.msra.mxu1 %v2209_v32 }
 0x221   :  { %v1312_v51 = vpop.f32.mrb[32].mxu0  ;;  %2212 = vmatprep.subr.bf16.mxu1 %v2211_v6 }
 0x222   :  { %v2311_v31 = vadd.f32 %v1312_v51, %v3089_v38  ;;  %v1314_v24 = vpop.f32.mrb[33].mxu0 }
 0x223   :  { %v2312_v36 = vadd.f32 %v1314_v24, %v3092_v23 }
 0x224   :  { %v1411_v10 = vmul.f32 0.01, %v2311_v31 }
 0x225   :  { %v1318_v16 = vpop.f32.mrb[34].mxu0  ;;  %v1412_v25 = vmul.f32 0.01, %v2312_v36 }
 0x226   :  { %v2313_v22 = vadd.f32 %v1318_v16, %v3089_v38  ;;  %v1320_v46 = vpop.f32.mrb[35].mxu0  ;;  %v1507_v57 = vmax.f32 %v2311_v31, %v1411_v10 }
 0x227   :  { %v2314_v27 = vadd.f32 %v1320_v46, %v3092_v23  ;;  %v1508_v12 = vmax.f32 %v2312_v36, %v1412_v25 }
 0x228   :  { %v1417_v26 = vmul.f32 0.01, %v2313_v22  ;;  %2214 = vmatpush1.bf16.xpose.msra.mxu1 %v2213_v4 }
 0x229   :  { %v1418_v63 = vmul.f32 0.01, %v2314_v27  ;;  %v1324_v43 = vpop.f32.mrb[36].mxu0 }
 0x22a   :  { %v1513_v7 = vmax.f32 %v2313_v22, %v1417_v26  ;;  %v2315_v8 = vadd.f32 %v1324_v43, %v3089_v38  ;;  %v1326_v11 = vpop.f32.mrb[37].mxu0 }
 0x22b   :  { %v1514_v14 = vmax.f32 %v2314_v27, %v1418_v63  ;;  %v2316_v15 = vadd.f32 %v1326_v11, %v3092_v23 }
 0x22c   :  { %v2217_v34 = vpack.c.bf16 %v1513_v7, %v1507_v57  ;;  %v1423_v41 = vmul.f32 0.01, %v2315_v8 }
 0x22d   :  { %v1330_v19 = vpop.f32.mrb[38].mxu0  ;;  %v2215_v32 = vpack.c.bf16 %v1514_v14, %v1508_v12  ;;  %v1424_v49 = vmul.f32 0.01, %v2316_v15 }
 0x22e   :  { %v2317_v53 = vadd.f32 %v1330_v19, %v3089_v38  ;;  %v1332_v21 = vpop.f32.mrb[39].mxu0  ;;  %v1519_v0 = vmax.f32 %v2315_v8, %v1423_v41 }
 0x22f   :  { %v2318_v17 = vadd.f32 %v1332_v21, %v3092_v23  ;;  %2216 = vmatprep.subr.bf16.mxu1 %v2215_v32  ;;  %1768 = vmatmul.mubr.f32.vlgmr.msra.gmra.mrb[32].mxu1 %v1614_v44  ;;  %v1520_v18 = vmax.f32 %v2316_v15, %v1424_v49 }
 0x230   :  { %v1429_v35 = vmul.f32 0.01, %v2317_v53  ;;  %2218 = vmatpush1.bf16.xpose.msra.mxu1 %v2217_v34  ;;  %1837 = vmatprep.mubr.f32.mxu1 %v1626_v52 }
 0x231   :  { %v1430_v40 = vmul.f32 0.01, %v2318_v17  ;;  %v1336_v13 = vpop.f32.mrb[40].mxu0 }
 0x232   :  { %v1525_v54 = vmax.f32 %v2317_v53, %v1429_v35  ;;  %v2319_v55 = vadd.f32 %v1336_v13, %v3089_v38  ;;  %v1338_v58 = vpop.f32.mrb[41].mxu0 }
 0x233   :  { %v1526_v50 = vmax.f32 %v2318_v17, %v1430_v40  ;;  %v2320_v60 = vadd.f32 %v1338_v58, %v3092_v23 }
 0x234   :  { %v2221_v61 = vpack.c.bf16 %v1525_v54, %v1519_v0  ;;  %v1435_v20 = vmul.f32 0.01, %v2319_v55 }
 0x235   :  { %v1342_v28 = vpop.f32.mrb[42].mxu0  ;;  %v2219_v29 = vpack.c.bf16 %v1526_v50, %v1520_v18  ;;  %v1436_v30 = vmul.f32 0.01, %v2320_v60 }
 0x236   :  { %v2321_v42 = vadd.f32 %v1342_v28, %v3089_v38  ;;  %v1344_v2 = vpop.f32.mrb[43].mxu0  ;;  %v1531_v59 = vmax.f32 %v2319_v55, %v1435_v20 }
 0x237   :  { %v2322_v45 = vadd.f32 %v1344_v2, %v3092_v23  ;;  %2220 = vmatprep.subr.bf16.mxu1 %v2219_v29  ;;  %v1532_v47 = vmax.f32 %v2320_v60, %v1436_v30 }
 0x238   :  { %v1441_v33 = vmul.f32 0.01, %v2321_v42  ;;  %2222 = vmatpush1.bf16.xpose.msra.mxu1 %v2221_v61 }
 0x239   :  { %v1442_v37 = vmul.f32 0.01, %v2322_v45  ;;  %v1348_v56 = vpop.f32.mrb[44].mxu0 }
 0x23a   :  { %v1537_v3 = vmax.f32 %v2321_v42, %v1441_v33  ;;  %v2323_v48 = vadd.f32 %v1348_v56, %v3089_v38  ;;  %v1350_v4 = vpop.f32.mrb[45].mxu0 }
 0x23b   :  { %v1538_v6 = vmax.f32 %v2322_v45, %v1442_v37  ;;  %v2324_v5 = vadd.f32 %v1350_v4, %v3092_v23 }
 0x23c   :  { %v2225_v9 = vpack.c.bf16 %v1537_v3, %v1531_v59  ;;  %v1447_v31 = vmul.f32 0.01, %v2323_v48 }
 0x23d   :  { %v1354_v1 = vpop.f32.mrb[46].mxu0  ;;  %v2223_v51 = vpack.c.bf16 %v1538_v6, %v1532_v47  ;;  %v1448_v16 = vmul.f32 0.01, %v2324_v5 }
 0x23e   :  { %v2325_v24 = vadd.f32 %v1354_v1, %v3089_v38  ;;  %v1356_v36 = vpop.f32.mrb[47].mxu0  ;;  %v1543_v27 = vmax.f32 %v2323_v48, %v1447_v31 }
 0x23f   :  { %v2326_v10 = vadd.f32 %v1356_v36, %v3092_v23  ;;  %2224 = vmatprep.subr.bf16.mxu1 %v2223_v51  ;;  %v1544_v57 = vmax.f32 %v2324_v5, %v1448_v16 }
 0x240   :  { %v1453_v22 = vmul.f32 0.01, %v2325_v24  ;;  %2226 = vmatpush1.bf16.xpose.msra.mxu1 %v2225_v9 }
 0x241   :  { %v1454_v46 = vmul.f32 0.01, %v2326_v10  ;;  %v1360_v25 = vpop.f32.mrb[48].mxu0 }
 0x242   :  { %v1549_v26 = vmax.f32 %v2325_v24, %v1453_v22  ;;  %v2327_v63 = vadd.f32 %v1360_v25, %v3089_v38  ;;  %v1362_v43 = vpop.f32.mrb[49].mxu0 }
 0x243   :  { %v1550_v7 = vmax.f32 %v2326_v10, %v1454_v46  ;;  %v2328_v8 = vadd.f32 %v1362_v43, %v3092_v23 }
 0x244   :  { %v2229_v11 = vpack.c.bf16 %v1549_v26, %v1543_v27  ;;  %v1459_v15 = vmul.f32 0.01, %v2327_v63 }
 0x245   :  { %v1366_v12 = vpop.f32.mrb[50].mxu0  ;;  %v2227_v14 = vpack.c.bf16 %v1550_v7, %v1544_v57  ;;  %v1460_v52 = vmul.f32 0.01, %v2328_v8 }
 0x246   :  { %v2329_v44 = vadd.f32 %v1366_v12, %v3089_v38  ;;  %v1368_v34 = vpop.f32.mrb[51].mxu0  ;;  %v1555_v21 = vmax.f32 %v2327_v63, %v1459_v15 }
 0x247   :  { %v2330_v19 = vadd.f32 %v1368_v34, %v3092_v23  ;;  %2228 = vmatprep.subr.bf16.mxu1 %v2227_v14  ;;  %v1556_v40 = vmax.f32 %v2328_v8, %v1460_v52 }
 0x248   :  { %v1465_v32 = vmul.f32 0.01, %v2329_v44  ;;  %2230 = vmatpush1.bf16.xpose.msra.mxu1 %v2229_v11 }
 0x249   :  { %v1466_v41 = vmul.f32 0.01, %v2330_v19  ;;  %v1372_v53 = vpop.f32.mrb[52].mxu0 }
 0x24a   :  { %v1561_v49 = vmax.f32 %v2329_v44, %v1465_v32  ;;  %v2331_v17 = vadd.f32 %v1372_v53, %v3089_v38  ;;  %v1374_v35 = vpop.f32.mrb[53].mxu0  ;;  %v2454_v53 = vld [vmem:[#allocation9] sm:$0x3f] }
 0x24b   :  { %v1562_v13 = vmax.f32 %v2330_v19, %v1466_v41  ;;  %v2332_v0 = vadd.f32 %v1374_v35, %v3092_v23 }
 0x24c   :  { %v2233_v54 = vpack.c.bf16 %v1561_v49, %v1555_v21  ;;  %v1471_v18 = vmul.f32 0.01, %v2331_v17 }
 0x24d   :  { %v1378_v55 = vpop.f32.mrb[54].mxu0  ;;  %v2231_v58 = vpack.c.bf16 %v1562_v13, %v1556_v40  ;;  %v1472_v61 = vmul.f32 0.01, %v2332_v0 }
 0x24e   :  { %v2333_v50 = vadd.f32 %v1378_v55, %v3089_v38  ;;  %v1380_v60 = vpop.f32.mrb[55].mxu0  ;;  %v1567_v2 = vmax.f32 %v2331_v17, %v1471_v18 }
 0x24f   :  { %v2334_v28 = vadd.f32 %v1380_v60, %v3092_v23  ;;  %2232 = vmatprep.subr.bf16.mxu1 %v2231_v58  ;;  %v1568_v37 = vmax.f32 %v2332_v0, %v1472_v61 }
 0x250   :  { %v1477_v29 = vmul.f32 0.01, %v2333_v50  ;;  %2234 = vmatpush1.bf16.xpose.msra.mxu1 %v2233_v54 }
 0x251   :  { %v1478_v20 = vmul.f32 0.01, %v2334_v28  ;;  %v1384_v42 = vpop.f32.mrb[56].mxu0 }
 0x252   :  { %v1573_v30 = vmax.f32 %v2333_v50, %v1477_v29  ;;  %v2335_v45 = vadd.f32 %v1384_v42, %v3089_v38  ;;  %v1386_v33 = vpop.f32.mrb[57].mxu0 }
 0x253   :  { %v1574_v56 = vmax.f32 %v2334_v28, %v1478_v20  ;;  %v2336_v59 = vadd.f32 %v1386_v33, %v3092_v23 }
 0x254   :  { %v2237_v3 = vpack.c.bf16 %v1573_v30, %v1567_v2  ;;  %v1483_v47 = vmul.f32 0.01, %v2335_v45 }
 0x255   :  { %v1390_v48 = vpop.f32.mrb[58].mxu0  ;;  %v2235_v4 = vpack.c.bf16 %v1574_v56, %v1568_v37  ;;  %v1484_v9 = vmul.f32 0.01, %v2336_v59 }
 0x256   :  { %v2337_v6 = vadd.f32 %v1390_v48, %v3089_v38  ;;  %v1392_v5 = vpop.f32.mrb[59].mxu0  ;;  %v1579_v36 = vmax.f32 %v2335_v45, %v1483_v47 }
 0x257   :  { %v2338_v1 = vadd.f32 %v1392_v5, %v3092_v23  ;;  %2236 = vmatprep.subr.bf16.mxu1 %v2235_v4  ;;  %v1580_v46 = vmax.f32 %v2336_v59, %v1484_v9 }
 0x258   :  { %v1489_v51 = vmul.f32 0.01, %v2337_v6  ;;  %2238 = vmatpush1.bf16.xpose.msra.mxu1 %v2237_v3 }
 0x259   :  { %v1490_v31 = vmul.f32 0.01, %v2338_v1  ;;  %v1396_v24 = vpop.f32.mrb[60].mxu0 }
 0x25a   :  { %v1585_v16 = vmax.f32 %v2337_v6, %v1489_v51  ;;  %v2339_v10 = vadd.f32 %v1396_v24, %v3089_v38  ;;  %v1398_v22 = vpop.f32.mrb[61].mxu0 }
 0x25b   :  { %v1586_v25 = vmax.f32 %v2338_v1, %v1490_v31  ;;  %v2340_v27 = vadd.f32 %v1398_v22, %v3092_v23 }
 0x25c   :  { %v2241_v26 = vpack.c.bf16 %v1585_v16, %v1579_v36  ;;  %v1495_v57 = vmul.f32 0.01, %v2339_v10 }
 0x25d   :  { %v1402_v63 = vpop.f32.mrb[62].mxu0  ;;  %v2239_v43 = vpack.c.bf16 %v1586_v25, %v1580_v46  ;;  %v1496_v11 = vmul.f32 0.01, %v2340_v27 }
 0x25e   :  { %v2341_v7 = vadd.f32 %v1402_v63, %v3089_v38  ;;  %v1404_v8 = vpop.f32.mrb[63].mxu0  ;;  %v1591_v44 = vmax.f32 %v2339_v10, %v1495_v57  ;;  %v1622_v38 = vrot.slane %v2454_v53, %v429_v62 }
 0x25f   :  { %v2342_v12 = vadd.f32 %v1404_v8, %v3092_v23  ;;  %2240 = vmatprep.subr.bf16.mxu1 %v2239_v43  ;;  %v1592_v52 = vmax.f32 %v2340_v27, %v1496_v11  ;;  %v1601_v23 = vstv %s3151_s4 }
 0x260   :  { %v1501_v14 = vmul.f32 0.01, %v2341_v7  ;;  %2242 = vmatpush1.bf16.xpose.msra.mxu1 %v2241_v26 }
 0x261   :  { %v1502_v15 = vmul.f32 0.01, %v2342_v12 }
 0x262   :  { %v1597_v34 = vmax.f32 %v2341_v7, %v1501_v14 }
 0x263   :  { %v1598_v19 = vmax.f32 %v2342_v12, %v1502_v15 }
 0x264   :  { %v2245_v32 = vpack.c.bf16 %v1597_v34, %v1591_v44 }
 0x265   :  { %v2243_v41 = vpack.c.bf16 %v1598_v19, %v1592_v52 }
 0x267   :  { %2244 = vmatprep.subr.bf16.mxu1 %v2243_v41 }
 0x268   :  { %2246 = vmatpush1.bf16.xpose.msra.mxu1 %v2245_v32 }
 0x26f   :  { %1838 = vmatmul.mubr.f32.vlgmr.msra.gmra.mrb[32].mxu1 %v1622_v38 }
 0x342   :  { %v1839_v21 = vpop.f32.mrb[32].mxu1 }
 0x343   :  { %v2343_v49 = vadd.f32 %v1839_v21, %v1601_v23  ;;  %v1841_v17 = vpop.f32.mrb[33].mxu1 }
 0x345   :  { %v1843_v35 = vmul.f32 0.01, %v2343_v49 }
 0x347   :  { %v1844_v40 = vmax.f32 %v2343_v49, %v1843_v35 }
 0x349   :  { %1845 = vst [vmem:[#allocation11] sm:$0x1] %v1844_v40 }
 0x34a   :  { %2554 = shalt.err (!%p2551_p8)
}
 0x34b   :  { %s2555_s4 = scalar_lea.hbm %s3152_s5, 16 }
 0x34c   :  { %p2556_p9 = scmp.ne.s32.totalorder %s3152_s5, %s2555_s4  ;;  %p2559_p10 = scmp.lt.u32.totalorder %s2555_s4, %s3152_s5 }
 0x34e   :  { %p2561_p11 = pnand %p2559_p10, %p2556_p9 }
 0x350   :  { %2564 = shalt.err (!%p2561_p11)
}
 0x351   :  { %1855 = dma.vmem_to_hbm [thread:$0]  %s1853_s18, 16, %s3152_s5, [#allocation5]  }
 0x352   :  { %2571 = dma.done.wait [#allocation5], 16  }
 0x353   :  { %2572 = vsyncadd [#allocation5], 4294967280 }
 0x354   :  { %1859 = vsyncpa [#allocation4], 1 }
 0x355   :  { %1860 = vsyncpa [#allocation7], 1 }
 0x356   :  { %1861 = vsyncpa [#allocation10], 1 }
 0x357   :  { %1862 = vsyncpa [#allocation5], 1 }

</bundles_post_ra>
